<compile_context>
chip_gen: v7x
topology: tpu7x:2x2x1
jax: 0.10.0
libtpu: 0.0.40
codegen_flags: <defaults>
</compile_context>

<pallas_src>
import math

import jax
import jax.numpy as jnp
import numpy as np
from jax.experimental import pallas as pl
from jax.experimental.pallas import tpu as pltpu

KTAP = 21          # largest depthwise kernel size; 7/11/21 fold into 21 taps
PAD = KTAP // 2    # 10


def _round_up(x, m):
    return (x + m - 1) // m * m


# ------------------------------ Pallas kernel -------------------------------

def _msm_kernel(x_ref, gamma_ref, beta_ref, bias_ref, wh_ref, wv_ref,
                o_ref, bufw_ref, bufh_ref):
    _, C, H, W = x_ref.shape
    ktap = wh_ref.shape[0]
    pad = ktap // 2
    wp = bufw_ref.shape[1]                       # lane-padded row-buffer width

    # WithBias LayerNorm statistics over the channel dim.  C is the leading
    # (untiled) dim, so the reduction is a plain sum of (H, W) slabs (VALU).
    x = x_ref[0].astype(jnp.float32)             # (C, H, W)
    mu = jnp.mean(x, axis=0)                     # (H, W)
    xc = x - mu[None]
    var = jnp.mean(xc * xc, axis=0)              # (H, W)
    rstd = jax.lax.rsqrt(var + 1e-5)

    # Zero only the halo strips of the padded scratch buffers.
    bufw_ref[:, W:] = jnp.zeros((H, wp - W), jnp.float32)
    bufh_ref[:pad, :] = jnp.zeros((pad, W), jnp.float32)
    bufh_ref[pad + H:, :] = jnp.zeros((pad, W), jnp.float32)

    def channel_body(c, carry):
        g = gamma_ref[c]
        bt = beta_ref[c]
        xn = (x_ref[0, c].astype(jnp.float32) - mu) * rstd * g + bt   # (H, W)

        # Horizontal (1 x 21) taps: W is the lane dim; each tap is an XLU lane
        # rotation of the zero-halo row buffer (wrapped lanes land in the
        # zeroed halo, so 'same' zero padding falls out for free).
        bufw_ref[:, :W] = xn
        xw = bufw_ref[...]                       # (H, wp)
        acc = jnp.zeros((H, W), jnp.float32)
        for k in range(ktap):
            shift = (pad - k) % wp
            xs = xw if shift == 0 else pltpu.roll(xw, shift=shift, axis=1)
            acc = acc + wh_ref[k, c] * xs[:, :W]

        # Vertical (21 x 1) taps: shifted sublane windows of the zero-padded
        # column buffer; the relayout work overlaps the VALU fma stream.
        bufh_ref[pad:pad + H, :] = xn
        for k in range(ktap):
            acc = acc + wv_ref[k, c] * bufh_ref[k:k + H, :]

        o_ref[0, c] = (acc + bias_ref[c]).astype(o_ref.dtype)
        return carry

    jax.lax.fori_loop(0, C, channel_body, 0)


# ------------------------------ MSM wrapper ----------------------------------

def _fold_taps(w_list):
    """Sum centered, zero-padded depthwise kernels into one (KTAP, C) bank."""
    taps = None
    for w in w_list:
        C = w.shape[0]
        k = int(np.prod(w.shape[1:]))            # (C,1,1,K) or (C,1,K,1) -> K
        assert k % 2 == 1 and k <= KTAP, "kernel sizes must be odd and <= 21"
        wk = jnp.transpose(w.reshape(C, k).astype(jnp.float32))   # (K, C)
        off = (KTAP - k) // 2
        wk = jnp.pad(wk, ((off, KTAP - k - off), (0, 0)))
        taps = wk if taps is None else taps + wk
    return taps                                   # (KTAP, C)


def msm_pallas(x, gamma, beta, conv_w_h, conv_b_h, conv_w_v, conv_b_v):
    """MSM forward (NCHW in / NCHW out) with the Pallas kernel."""
    B, C, H, W = x.shape
    wp = _round_up(W + PAD, 128)                 # lane-padded row-buffer width

    wh = _fold_taps(conv_w_h)                    # (21, C) folded 1xK taps
    wv = _fold_taps(conv_w_v)                    # (21, C) folded Kx1 taps
    bias = (sum(conv_b_h) + sum(conv_b_v)).astype(jnp.float32)   # (C,)
    gamma = gamma.astype(jnp.float32)
    beta = beta.astype(jnp.float32)

    smem = lambda: pl.BlockSpec(memory_space=pltpu.MemorySpace.SMEM)

    return pl.pallas_call(
        _msm_kernel,
        out_shape=jax.ShapeDtypeStruct((B, C, H, W), x.dtype),
        grid_spec=pltpu.PrefetchScalarGridSpec(
            num_scalar_prefetch=0,
            grid=(B,),
            in_specs=[
                pl.BlockSpec((1, C, H, W), lambda b: (b, 0, 0, 0)),
                smem(),        # gamma (C,)
                smem(),        # beta  (C,)
                smem(),        # summed conv bias (C,)
                smem(),        # folded horizontal taps (21, C)
                smem(),        # folded vertical taps   (21, C)
            ],
            out_specs=pl.BlockSpec((1, C, H, W), lambda b: (b, 0, 0, 0)),
            scratch_shapes=[
                pltpu.VMEM((H, wp), jnp.float32),           # row buffer + halo
                pltpu.VMEM((H + 2 * PAD, W), jnp.float32),  # column buffer + halos
            ],
        ),
        compiler_params=pltpu.CompilerParams(
            dimension_semantics=("parallel",),
            vmem_limit_bytes=32 * 1024 * 1024,
        ),
        # TODO(synk): for very large spatial sizes on v7x (64 MiB VMEM) add an
        # H-tile grid axis with a +/-10-row halo (manual DMA) so blocks stay
        # small and both TensorCores get independent spatial work.
    )(x, gamma, beta, bias, wh, wv)


def msm_reference(x, gamma, beta, conv_w_h, conv_b_h, conv_w_v, conv_b_v):
    """Pure-JAX reference (mirrors the PyTorch MSM forward, NCHW)."""
    B, C, H, W = x.shape
    xt = jnp.transpose(x, (0, 2, 3, 1))
    mu = jnp.mean(xt, axis=-1, keepdims=True)
    var = jnp.mean((xt - mu) ** 2, axis=-1, keepdims=True)
    xn = (xt - mu) / jnp.sqrt(var + 1e-5) * gamma + beta
    xn = jnp.transpose(xn, (0, 3, 1, 2))
    out = jnp.zeros_like(x)
    for w, b in list(zip(conv_w_h, conv_b_h)) + list(zip(conv_w_v, conv_b_v)):
        kh, kw = int(w.shape[2]), int(w.shape[3])
        o = jax.lax.conv_general_dilated(
            xn, w, window_strides=(1, 1),
            padding=((kh // 2, kh // 2), (kw // 2, kw // 2)),
            dimension_numbers=("NCHW", "OIHW", "NCHW"),
            feature_group_count=C)
        out = out + o + b[None, :, None, None]
    return out


# --------------------- Deep_branch forward (JAX glue) ------------------------

def _layernorm_c(x, weight, bias):
    """LayerNorm3d (WithBias): to_3d -> LayerNorm(C) -> to_4d, kept in NCHW."""
    mu = jnp.mean(x, axis=1, keepdims=True)
    var = jnp.mean((x - mu) ** 2, axis=1, keepdims=True)
    return ((x - mu) / jnp.sqrt(var + 1e-5) * weight[None, :, None, None]
            + bias[None, :, None, None])


def _conv2d(x, w, b=None, padding=(0, 0), groups=1):
    out = jax.lax.conv_general_dilated(
        x, w, window_strides=(1, 1),
        padding=((padding[0], padding[0]), (padding[1], padding[1])),
        dimension_numbers=("NCHW", "OIHW", "NCHW"),
        feature_group_count=groups)
    if b is not None:
        out = out + b[None, :, None, None]
    return out


def mssa_forward(p, E, msm_fn):
    B, C, H, W = E.shape
    q = msm_fn(E, *p["msmq"]).reshape(B, 1, C, H * W)
    k = msm_fn(E, *p["msmk"]).reshape(B, 1, C, H * W)
    v = msm_fn(E, *p["msmv"]).reshape(B, 1, C, H * W)
    q = q / jnp.maximum(jnp.sqrt(jnp.sum(q * q, axis=-1, keepdims=True)), 1e-12)
    k = k / jnp.maximum(jnp.sqrt(jnp.sum(k * k, axis=-1, keepdims=True)), 1e-12)
    attn = jnp.einsum("bhcn,bhdn->bhcd", q, k) / math.sqrt(C)
    # psi = InstanceNorm2d(1): normalize each (C, C) attention map, no affine.
    mu = jnp.mean(attn, axis=(-2, -1), keepdims=True)
    var = jnp.mean((attn - mu) ** 2, axis=(-2, -1), keepdims=True)
    attn = (attn - mu) / jnp.sqrt(var + 1e-5)
    attn = jax.nn.softmax(attn, axis=-1)
    out = jnp.einsum("bhcd,bhdn->bhcn", attn, v)
    out = jnp.mean(out, axis=1).reshape(B, C, H, W)
    return _conv2d(out, p["proj_w"], p["proj_b"])


def cbam_forward(p, x):
    avg = jnp.mean(x, axis=(2, 3), keepdims=True)
    mx = jnp.max(x, axis=(2, 3), keepdims=True)

    def mlp(t):
        t = _conv2d(t, p["mlp_w1"])
        t = jax.nn.relu(t)
        return _conv2d(t, p["mlp_w2"])

    channel_out = jax.nn.sigmoid(mlp(mx) + mlp(avg))
    x = channel_out * x
    mx_s = jnp.max(x, axis=1, keepdims=True)
    avg_s = jnp.mean(x, axis=1, keepdims=True)
    spatial = _conv2d(jnp.concatenate([mx_s, avg_s], axis=1),
                      p["spatial_w"], padding=(3, 3))
    return jax.nn.sigmoid(spatial) * x


def deep_branch_forward(p, E, msm_fn=msm_pallas):
    """Deep_branch.forward: MSSA + residual, LayerNorm, CBAM, residual."""
    # TODO(synk): the MSSA attention / 1x1 projection / CBAM glue are small
    # dense ops left to XLA rather than fused into the Pallas kernel.
    cx = mssa_forward(p["mssa"], E, msm_fn) + E
    x = _layernorm_c(cx, p["norms_w"], p["norms_b"])
    x = cbam_forward(p["cbam"], x)
    return x + cx


# ------------------------------ parameters -----------------------------------

def init_msm_params(key, C):
    sizes = (7, 11, 21)
    ks = jax.random.split(key, 14)
    gamma = 1.0 + 0.1 * jax.random.normal(ks[0], (C,), jnp.float32)
    beta = 0.1 * jax.random.normal(ks[1], (C,), jnp.float32)
    w_h = [0.1 * jax.random.normal(ks[2 + i], (C, 1, 1, s), jnp.float32)
           for i, s in enumerate(sizes)]
    b_h = [0.1 * jax.random.normal(ks[5 + i], (C,), jnp.float32) for i in range(3)]
    w_v = [0.1 * jax.random.normal(ks[8 + i], (C, 1, s, 1), jnp.float32)
           for i, s in enumerate(sizes)]
    b_v = [0.1 * jax.random.normal(ks[11 + i], (C,), jnp.float32) for i in range(3)]
    return (gamma, beta, w_h, b_h, w_v, b_v)


def init_deep_branch_params(key, C):
    kq, kk, kv, kr = jax.random.split(key, 4)
    ks = jax.random.split(kr, 8)
    red = max(C // 16, 1)   # CBAM bottleneck width (reduction=16)
    return {
        "mssa": {
            "msmq": init_msm_params(kq, C),
            "msmk": init_msm_params(kk, C),
            "msmv": init_msm_params(kv, C),
            "proj_w": 0.1 * jax.random.normal(ks[0], (C, C, 1, 1), jnp.float32),
            "proj_b": 0.1 * jax.random.normal(ks[1], (C,), jnp.float32),
        },
        "norms_w": 1.0 + 0.1 * jax.random.normal(ks[2], (C,), jnp.float32),
        "norms_b": 0.1 * jax.random.normal(ks[3], (C,), jnp.float32),
        "cbam": {
            "mlp_w1": (1.0 / math.sqrt(C))
                      * jax.random.normal(ks[4], (red, C, 1, 1), jnp.float32),
            "mlp_w2": (1.0 / math.sqrt(red))
                      * jax.random.normal(ks[5], (C, red, 1, 1), jnp.float32),
            "spatial_w": 0.1 * jax.random.normal(ks[6], (1, 2, 7, 7), jnp.float32),
        },
    }


if __name__ == "__main__":
    # channel_num = 16 so CBAMLayer's reduction=16 bottleneck (C // 16) is valid.
    B, C, H, W = 2, 16, 16, 16

    key = jax.random.PRNGKey(0)
    k_in, k_par = jax.random.split(key)
    E = jax.random.normal(k_in, (B, C, H, W), jnp.float32)
    params = init_deep_branch_params(k_par, C)

    # 1) Validate the Pallas MSM kernel against an independent lax.conv reference.
    msm_q = params["mssa"]["msmq"]
    out_pal = jax.block_until_ready(msm_pallas(E, *msm_q))
    out_ref = msm_reference(E, *msm_q)
    np.testing.assert_allclose(np.asarray(out_pal), np.asarray(out_ref),
                               rtol=1e-4, atol=1e-4)

    # 2) Full Deep_branch forward with the Pallas MSM inside MSSA.
    y = jax.block_until_ready(deep_branch_forward(params, E, msm_fn=msm_pallas))
    y_ref = deep_branch_forward(params, E, msm_fn=msm_reference)
    np.testing.assert_allclose(np.asarray(y), np.asarray(y_ref),
                               rtol=1e-3, atol=1e-3)
    assert y.shape == (B, C, H, W)

    print("KERNEL_OK")
</pallas_src>

<mosaic_0001>
module attributes {stable_mosaic.version = 11 : i64} {
  func.func @_msm_kernel(%arg0: i32, %arg1: memref<1x16x16x16xf32, #tpu.memory_space<vmem>>, %arg2: memref<16xf32, #tpu.memory_space<smem>>, %arg3: memref<16xf32, #tpu.memory_space<smem>>, %arg4: memref<16xf32, #tpu.memory_space<smem>>, %arg5: memref<21x16xf32, #tpu.memory_space<smem>>, %arg6: memref<21x16xf32, #tpu.memory_space<smem>>, %arg7: memref<1x16x16x16xf32, #tpu.memory_space<vmem>>, %arg8: memref<16x128xf32, #tpu.memory_space<vmem>>, %arg9: memref<36x16xf32, #tpu.memory_space<vmem>>) attributes {dimension_semantics = [#tpu.dimension_semantics<parallel>], iteration_bounds = array<i64: 2>, scalar_prefetch = 0 : i64, scratch_operands = 2 : i64, tpu.core_type = #tpu.core_type<tc>, window_params = [{transform_indices = @transform_0, window_bounds = array<i64: 1, 16, 16, 16>}, {transform_indices = @transform_1, window_bounds = array<i64: 16>}, {transform_indices = @transform_2, window_bounds = array<i64: 16>}, {transform_indices = @transform_3, window_bounds = array<i64: 16>}, {transform_indices = @transform_4, window_bounds = array<i64: 21, 16>}, {transform_indices = @transform_5, window_bounds = array<i64: 21, 16>}, {transform_indices = @transform_6, window_bounds = array<i64: 1, 16, 16, 16>}]} {
    %c0 = arith.constant 0 : index
    %c0_0 = arith.constant 0 : index
    %c0_1 = arith.constant 0 : index
    %c0_2 = arith.constant 0 : index
    %0 = vector.load %arg1[%c0, %c0_0, %c0_1, %c0_2] : memref<1x16x16x16xf32, #tpu.memory_space<vmem>>, vector<1x16x16x16xf32>
    %1 = vector.shape_cast %0 : vector<1x16x16x16xf32> to vector<16x16x16xf32>
    %cst = arith.constant dense<0.000000e+00> : vector<16x16xf32>
    %2 = vector.multi_reduction <add>, %1, %cst [0] : vector<16x16x16xf32> to vector<16x16xf32>
    %cst_3 = arith.constant 1.600000e+01 : f32
    %3 = vector.broadcast %cst_3 : f32 to vector<16x16xf32>
    %4 = arith.divf %2, %3 : vector<16x16xf32>
    %5 = vector.shape_cast %4 : vector<16x16xf32> to vector<1x16x16xf32>
    %6 = vector.broadcast %5 : vector<1x16x16xf32> to vector<16x16x16xf32>
    %7 = arith.subf %1, %6 : vector<16x16x16xf32>
    %8 = arith.mulf %7, %7 : vector<16x16x16xf32>
    %cst_4 = arith.constant dense<0.000000e+00> : vector<16x16xf32>
    %9 = vector.multi_reduction <add>, %8, %cst_4 [0] : vector<16x16x16xf32> to vector<16x16xf32>
    %cst_5 = arith.constant 1.600000e+01 : f32
    %10 = vector.broadcast %cst_5 : f32 to vector<16x16xf32>
    %11 = arith.divf %9, %10 : vector<16x16xf32>
    %cst_6 = arith.constant 9.99999974E-6 : f32
    %12 = vector.broadcast %cst_6 : f32 to vector<16x16xf32>
    %13 = arith.addf %11, %12 : vector<16x16xf32>
    %14 = math.rsqrt %13 : vector<16x16xf32>
    %cst_7 = arith.constant 0.000000e+00 : f32
    %15 = vector.broadcast %cst_7 : f32 to vector<16x112xf32>
    %c0_8 = arith.constant 0 : index
    %c16 = arith.constant 16 : index
    %16 = vector.load %arg8[%c0_8, %c16] : memref<16x128xf32, #tpu.memory_space<vmem>>, vector<16x112xf32>
    tpu.vector_store %arg8[%c0_8, %c16], %15 {strides = array<i32>} : memref<16x128xf32, #tpu.memory_space<vmem>>, vector<16x112xf32>,
    %cst_9 = arith.constant 0.000000e+00 : f32
    %17 = vector.broadcast %cst_9 : f32 to vector<10x16xf32>
    %c0_10 = arith.constant 0 : index
    %c0_11 = arith.constant 0 : index
    %18 = vector.load %arg9[%c0_10, %c0_11] : memref<36x16xf32, #tpu.memory_space<vmem>>, vector<10x16xf32>
    tpu.vector_store %arg9[%c0_10, %c0_11], %17 {strides = array<i32>} : memref<36x16xf32, #tpu.memory_space<vmem>>, vector<10x16xf32>,
    %cst_12 = arith.constant 0.000000e+00 : f32
    %19 = vector.broadcast %cst_12 : f32 to vector<10x16xf32>
    %c26 = arith.constant 26 : index
    %c0_13 = arith.constant 0 : index
    %20 = vector.load %arg9[%c26, %c0_13] : memref<36x16xf32, #tpu.memory_space<vmem>>, vector<10x16xf32>
    tpu.vector_store %arg9[%c26, %c0_13], %19 {strides = array<i32>} : memref<36x16xf32, #tpu.memory_space<vmem>>, vector<10x16xf32>,
    %c0_i32 = arith.constant 0 : i32
    %c16_i32 = arith.constant 16 : i32
    %21 = arith.addi %c0_i32, %c16_i32 : i32
    %c1_i32 = arith.constant 1 : i32
    scf.for %arg10 = %c0_i32 to %21 step %c1_i32  : i32 {
      %22 = arith.index_cast %arg10 : i32 to index
      %23 = memref.load %arg2[%22] : memref<16xf32, #tpu.memory_space<smem>>
      %24 = arith.index_cast %arg10 : i32 to index
      %25 = memref.load %arg3[%24] : memref<16xf32, #tpu.memory_space<smem>>
      %c0_15 = arith.constant 0 : index
      %26 = arith.index_cast %arg10 : i32 to index
      %c0_16 = arith.constant 0 : index
      %c0_17 = arith.constant 0 : index
      %27 = vector.load %arg1[%c0_15, %26, %c0_16, %c0_17] : memref<1x16x16x16xf32, #tpu.memory_space<vmem>>, vector<1x1x16x16xf32>
      %28 = vector.shape_cast %27 : vector<1x1x16x16xf32> to vector<16x16xf32>
      %29 = arith.subf %28, %4 : vector<16x16xf32>
      %30 = arith.mulf %29, %14 : vector<16x16xf32>
      %31 = vector.broadcast %23 : f32 to vector<16x16xf32>
      %32 = arith.mulf %30, %31 : vector<16x16xf32>
      %33 = vector.broadcast %25 : f32 to vector<16x16xf32>
      %34 = arith.addf %32, %33 : vector<16x16xf32>
      %c0_18 = arith.constant 0 : index
      %c0_19 = arith.constant 0 : index
      %35 = vector.load %arg8[%c0_18, %c0_19] : memref<16x128xf32, #tpu.memory_space<vmem>>, vector<16x16xf32>
      tpu.vector_store %arg8[%c0_18, %c0_19], %34 {strides = array<i32>} : memref<16x128xf32, #tpu.memory_space<vmem>>, vector<16x16xf32>,
      %c0_20 = arith.constant 0 : index
      %c0_21 = arith.constant 0 : index
      %36 = vector.load %arg8[%c0_20, %c0_21] : memref<16x128xf32, #tpu.memory_space<vmem>>, vector<16x128xf32>
      %cst_22 = arith.constant 0.000000e+00 : f32
      %37 = vector.broadcast %cst_22 : f32 to vector<16x16xf32>
      %c10_i32 = arith.constant 10 : i32
      %38 = tpu.dynamic_rotate %36 by %c10_i32 dim 1 : vector<16x128xf32>, i32 -> vector<16x128xf32>
      %c0_23 = arith.constant 0 : index
      %39 = arith.index_cast %arg10 : i32 to index
      %40 = memref.load %arg5[%c0_23, %39] : memref<21x16xf32, #tpu.memory_space<smem>>
      %41 = vector.extract_strided_slice %38 {offsets = [0, 0], sizes = [16, 16], strides = [1, 1]} : vector<16x128xf32> to vector<16x16xf32>
      %42 = vector.broadcast %40 : f32 to vector<16x16xf32>
      %43 = arith.mulf %42, %41 : vector<16x16xf32>
      %44 = arith.addf %37, %43 : vector<16x16xf32>
      %c9_i32 = arith.constant 9 : i32
      %45 = tpu.dynamic_rotate %36 by %c9_i32 dim 1 : vector<16x128xf32>, i32 -> vector<16x128xf32>
      %c1 = arith.constant 1 : index
      %46 = arith.index_cast %arg10 : i32 to index
      %47 = memref.load %arg5[%c1, %46] : memref<21x16xf32, #tpu.memory_space<smem>>
      %48 = vector.extract_strided_slice %45 {offsets = [0, 0], sizes = [16, 16], strides = [1, 1]} : vector<16x128xf32> to vector<16x16xf32>
      %49 = vector.broadcast %47 : f32 to vector<16x16xf32>
      %50 = arith.mulf %49, %48 : vector<16x16xf32>
      %51 = arith.addf %44, %50 : vector<16x16xf32>
      %c8_i32 = arith.constant 8 : i32
      %52 = tpu.dynamic_rotate %36 by %c8_i32 dim 1 : vector<16x128xf32>, i32 -> vector<16x128xf32>
      %c2 = arith.constant 2 : index
      %53 = arith.index_cast %arg10 : i32 to index
      %54 = memref.load %arg5[%c2, %53] : memref<21x16xf32, #tpu.memory_space<smem>>
      %55 = vector.extract_strided_slice %52 {offsets = [0, 0], sizes = [16, 16], strides = [1, 1]} : vector<16x128xf32> to vector<16x16xf32>
      %56 = vector.broadcast %54 : f32 to vector<16x16xf32>
      %57 = arith.mulf %56, %55 : vector<16x16xf32>
      %58 = arith.addf %51, %57 : vector<16x16xf32>
      %c7_i32 = arith.constant 7 : i32
      %59 = tpu.dynamic_rotate %36 by %c7_i32 dim 1 : vector<16x128xf32>, i32 -> vector<16x128xf32>
      %c3 = arith.constant 3 : index
      %60 = arith.index_cast %arg10 : i32 to index
      %61 = memref.load %arg5[%c3, %60] : memref<21x16xf32, #tpu.memory_space<smem>>
      %62 = vector.extract_strided_slice %59 {offsets = [0, 0], sizes = [16, 16], strides = [1, 1]} : vector<16x128xf32> to vector<16x16xf32>
      %63 = vector.broadcast %61 : f32 to vector<16x16xf32>
      %64 = arith.mulf %63, %62 : vector<16x16xf32>
      %65 = arith.addf %58, %64 : vector<16x16xf32>
      %c6_i32 = arith.constant 6 : i32
      %66 = tpu.dynamic_rotate %36 by %c6_i32 dim 1 : vector<16x128xf32>, i32 -> vector<16x128xf32>
      %c4 = arith.constant 4 : index
      %67 = arith.index_cast %arg10 : i32 to index
      %68 = memref.load %arg5[%c4, %67] : memref<21x16xf32, #tpu.memory_space<smem>>
      %69 = vector.extract_strided_slice %66 {offsets = [0, 0], sizes = [16, 16], strides = [1, 1]} : vector<16x128xf32> to vector<16x16xf32>
      %70 = vector.broadcast %68 : f32 to vector<16x16xf32>
      %71 = arith.mulf %70, %69 : vector<16x16xf32>
      %72 = arith.addf %65, %71 : vector<16x16xf32>
      %c5_i32 = arith.constant 5 : i32
      %73 = tpu.dynamic_rotate %36 by %c5_i32 dim 1 : vector<16x128xf32>, i32 -> vector<16x128xf32>
      %c5 = arith.constant 5 : index
      %74 = arith.index_cast %arg10 : i32 to index
      %75 = memref.load %arg5[%c5, %74] : memref<21x16xf32, #tpu.memory_space<smem>>
      %76 = vector.extract_strided_slice %73 {offsets = [0, 0], sizes = [16, 16], strides = [1, 1]} : vector<16x128xf32> to vector<16x16xf32>
      %77 = vector.broadcast %75 : f32 to vector<16x16xf32>
      %78 = arith.mulf %77, %76 : vector<16x16xf32>
      %79 = arith.addf %72, %78 : vector<16x16xf32>
      %c4_i32 = arith.constant 4 : i32
      %80 = tpu.dynamic_rotate %36 by %c4_i32 dim 1 : vector<16x128xf32>, i32 -> vector<16x128xf32>
      %c6 = arith.constant 6 : index
      %81 = arith.index_cast %arg10 : i32 to index
      %82 = memref.load %arg5[%c6, %81] : memref<21x16xf32, #tpu.memory_space<smem>>
      %83 = vector.extract_strided_slice %80 {offsets = [0, 0], sizes = [16, 16], strides = [1, 1]} : vector<16x128xf32> to vector<16x16xf32>
      %84 = vector.broadcast %82 : f32 to vector<16x16xf32>
      %85 = arith.mulf %84, %83 : vector<16x16xf32>
      %86 = arith.addf %79, %85 : vector<16x16xf32>
      %c3_i32 = arith.constant 3 : i32
      %87 = tpu.dynamic_rotate %36 by %c3_i32 dim 1 : vector<16x128xf32>, i32 -> vector<16x128xf32>
      %c7 = arith.constant 7 : index
      %88 = arith.index_cast %arg10 : i32 to index
      %89 = memref.load %arg5[%c7, %88] : memref<21x16xf32, #tpu.memory_space<smem>>
      %90 = vector.extract_strided_slice %87 {offsets = [0, 0], sizes = [16, 16], strides = [1, 1]} : vector<16x128xf32> to vector<16x16xf32>
      %91 = vector.broadcast %89 : f32 to vector<16x16xf32>
      %92 = arith.mulf %91, %90 : vector<16x16xf32>
      %93 = arith.addf %86, %92 : vector<16x16xf32>
      %c2_i32 = arith.constant 2 : i32
      %94 = tpu.dynamic_rotate %36 by %c2_i32 dim 1 : vector<16x128xf32>, i32 -> vector<16x128xf32>
      %c8 = arith.constant 8 : index
      %95 = arith.index_cast %arg10 : i32 to index
      %96 = memref.load %arg5[%c8, %95] : memref<21x16xf32, #tpu.memory_space<smem>>
      %97 = vector.extract_strided_slice %94 {offsets = [0, 0], sizes = [16, 16], strides = [1, 1]} : vector<16x128xf32> to vector<16x16xf32>
      %98 = vector.broadcast %96 : f32 to vector<16x16xf32>
      %99 = arith.mulf %98, %97 : vector<16x16xf32>
      %100 = arith.addf %93, %99 : vector<16x16xf32>
      %c1_i32_24 = arith.constant 1 : i32
      %101 = tpu.dynamic_rotate %36 by %c1_i32_24 dim 1 : vector<16x128xf32>, i32 -> vector<16x128xf32>
      %c9 = arith.constant 9 : index
      %102 = arith.index_cast %arg10 : i32 to index
      %103 = memref.load %arg5[%c9, %102] : memref<21x16xf32, #tpu.memory_space<smem>>
      %104 = vector.extract_strided_slice %101 {offsets = [0, 0], sizes = [16, 16], strides = [1, 1]} : vector<16x128xf32> to vector<16x16xf32>
      %105 = vector.broadcast %103 : f32 to vector<16x16xf32>
      %106 = arith.mulf %105, %104 : vector<16x16xf32>
      %107 = arith.addf %100, %106 : vector<16x16xf32>
      %c10 = arith.constant 10 : index
      %108 = arith.index_cast %arg10 : i32 to index
      %109 = memref.load %arg5[%c10, %108] : memref<21x16xf32, #tpu.memory_space<smem>>
      %110 = vector.extract_strided_slice %36 {offsets = [0, 0], sizes = [16, 16], strides = [1, 1]} : vector<16x128xf32> to vector<16x16xf32>
      %111 = vector.broadcast %109 : f32 to vector<16x16xf32>
      %112 = arith.mulf %111, %110 : vector<16x16xf32>
      %113 = arith.addf %107, %112 : vector<16x16xf32>
      %c127_i32 = arith.constant 127 : i32
      %114 = tpu.dynamic_rotate %36 by %c127_i32 dim 1 : vector<16x128xf32>, i32 -> vector<16x128xf32>
      %c11 = arith.constant 11 : index
      %115 = arith.index_cast %arg10 : i32 to index
      %116 = memref.load %arg5[%c11, %115] : memref<21x16xf32, #tpu.memory_space<smem>>
      %117 = vector.extract_strided_slice %114 {offsets = [0, 0], sizes = [16, 16], strides = [1, 1]} : vector<16x128xf32> to vector<16x16xf32>
      %118 = vector.broadcast %116 : f32 to vector<16x16xf32>
      %119 = arith.mulf %118, %117 : vector<16x16xf32>
      %120 = arith.addf %113, %119 : vector<16x16xf32>
      %c126_i32 = arith.constant 126 : i32
      %121 = tpu.dynamic_rotate %36 by %c126_i32 dim 1 : vector<16x128xf32>, i32 -> vector<16x128xf32>
      %c12 = arith.constant 12 : index
      %122 = arith.index_cast %arg10 : i32 to index
      %123 = memref.load %arg5[%c12, %122] : memref<21x16xf32, #tpu.memory_space<smem>>
      %124 = vector.extract_strided_slice %121 {offsets = [0, 0], sizes = [16, 16], strides = [1, 1]} : vector<16x128xf32> to vector<16x16xf32>
      %125 = vector.broadcast %123 : f32 to vector<16x16xf32>
      %126 = arith.mulf %125, %124 : vector<16x16xf32>
      %127 = arith.addf %120, %126 : vector<16x16xf32>
      %c125_i32 = arith.constant 125 : i32
      %128 = tpu.dynamic_rotate %36 by %c125_i32 dim 1 : vector<16x128xf32>, i32 -> vector<16x128xf32>
      %c13 = arith.constant 13 : index
      %129 = arith.index_cast %arg10 : i32 to index
      %130 = memref.load %arg5[%c13, %129] : memref<21x16xf32, #tpu.memory_space<smem>>
      %131 = vector.extract_strided_slice %128 {offsets = [0, 0], sizes = [16, 16], strides = [1, 1]} : vector<16x128xf32> to vector<16x16xf32>
      %132 = vector.broadcast %130 : f32 to vector<16x16xf32>
      %133 = arith.mulf %132, %131 : vector<16x16xf32>
      %134 = arith.addf %127, %133 : vector<16x16xf32>
      %c124_i32 = arith.constant 124 : i32
      %135 = tpu.dynamic_rotate %36 by %c124_i32 dim 1 : vector<16x128xf32>, i32 -> vector<16x128xf32>
      %c14 = arith.constant 14 : index
      %136 = arith.index_cast %arg10 : i32 to index
      %137 = memref.load %arg5[%c14, %136] : memref<21x16xf32, #tpu.memory_space<smem>>
      %138 = vector.extract_strided_slice %135 {offsets = [0, 0], sizes = [16, 16], strides = [1, 1]} : vector<16x128xf32> to vector<16x16xf32>
      %139 = vector.broadcast %137 : f32 to vector<16x16xf32>
      %140 = arith.mulf %139, %138 : vector<16x16xf32>
      %141 = arith.addf %134, %140 : vector<16x16xf32>
      %c123_i32 = arith.constant 123 : i32
      %142 = tpu.dynamic_rotate %36 by %c123_i32 dim 1 : vector<16x128xf32>, i32 -> vector<16x128xf32>
      %c15 = arith.constant 15 : index
      %143 = arith.index_cast %arg10 : i32 to index
      %144 = memref.load %arg5[%c15, %143] : memref<21x16xf32, #tpu.memory_space<smem>>
      %145 = vector.extract_strided_slice %142 {offsets = [0, 0], sizes = [16, 16], strides = [1, 1]} : vector<16x128xf32> to vector<16x16xf32>
      %146 = vector.broadcast %144 : f32 to vector<16x16xf32>
      %147 = arith.mulf %146, %145 : vector<16x16xf32>
      %148 = arith.addf %141, %147 : vector<16x16xf32>
      %c122_i32 = arith.constant 122 : i32
      %149 = tpu.dynamic_rotate %36 by %c122_i32 dim 1 : vector<16x128xf32>, i32 -> vector<16x128xf32>
      %c16_25 = arith.constant 16 : index
      %150 = arith.index_cast %arg10 : i32 to index
      %151 = memref.load %arg5[%c16_25, %150] : memref<21x16xf32, #tpu.memory_space<smem>>
      %152 = vector.extract_strided_slice %149 {offsets = [0, 0], sizes = [16, 16], strides = [1, 1]} : vector<16x128xf32> to vector<16x16xf32>
      %153 = vector.broadcast %151 : f32 to vector<16x16xf32>
      %154 = arith.mulf %153, %152 : vector<16x16xf32>
      %155 = arith.addf %148, %154 : vector<16x16xf32>
      %c121_i32 = arith.constant 121 : i32
      %156 = tpu.dynamic_rotate %36 by %c121_i32 dim 1 : vector<16x128xf32>, i32 -> vector<16x128xf32>
      %c17 = arith.constant 17 : index
      %157 = arith.index_cast %arg10 : i32 to index
      %158 = memref.load %arg5[%c17, %157] : memref<21x16xf32, #tpu.memory_space<smem>>
      %159 = vector.extract_strided_slice %156 {offsets = [0, 0], sizes = [16, 16], strides = [1, 1]} : vector<16x128xf32> to vector<16x16xf32>
      %160 = vector.broadcast %158 : f32 to vector<16x16xf32>
      %161 = arith.mulf %160, %159 : vector<16x16xf32>
      %162 = arith.addf %155, %161 : vector<16x16xf32>
      %c120_i32 = arith.constant 120 : i32
      %163 = tpu.dynamic_rotate %36 by %c120_i32 dim 1 : vector<16x128xf32>, i32 -> vector<16x128xf32>
      %c18 = arith.constant 18 : index
      %164 = arith.index_cast %arg10 : i32 to index
      %165 = memref.load %arg5[%c18, %164] : memref<21x16xf32, #tpu.memory_space<smem>>
      %166 = vector.extract_strided_slice %163 {offsets = [0, 0], sizes = [16, 16], strides = [1, 1]} : vector<16x128xf32> to vector<16x16xf32>
      %167 = vector.broadcast %165 : f32 to vector<16x16xf32>
      %168 = arith.mulf %167, %166 : vector<16x16xf32>
      %169 = arith.addf %162, %168 : vector<16x16xf32>
      %c119_i32 = arith.constant 119 : i32
      %170 = tpu.dynamic_rotate %36 by %c119_i32 dim 1 : vector<16x128xf32>, i32 -> vector<16x128xf32>
      %c19 = arith.constant 19 : index
      %171 = arith.index_cast %arg10 : i32 to index
      %172 = memref.load %arg5[%c19, %171] : memref<21x16xf32, #tpu.memory_space<smem>>
      %173 = vector.extract_strided_slice %170 {offsets = [0, 0], sizes = [16, 16], strides = [1, 1]} : vector<16x128xf32> to vector<16x16xf32>
      %174 = vector.broadcast %172 : f32 to vector<16x16xf32>
      %175 = arith.mulf %174, %173 : vector<16x16xf32>
      %176 = arith.addf %169, %175 : vector<16x16xf32>
      %c118_i32 = arith.constant 118 : i32
      %177 = tpu.dynamic_rotate %36 by %c118_i32 dim 1 : vector<16x128xf32>, i32 -> vector<16x128xf32>
      %c20 = arith.constant 20 : index
      %178 = arith.index_cast %arg10 : i32 to index
      %179 = memref.load %arg5[%c20, %178] : memref<21x16xf32, #tpu.memory_space<smem>>
      %180 = vector.extract_strided_slice %177 {offsets = [0, 0], sizes = [16, 16], strides = [1, 1]} : vector<16x128xf32> to vector<16x16xf32>
      %181 = vector.broadcast %179 : f32 to vector<16x16xf32>
      %182 = arith.mulf %181, %180 : vector<16x16xf32>
      %183 = arith.addf %176, %182 : vector<16x16xf32>
      %c10_26 = arith.constant 10 : index
      %c0_27 = arith.constant 0 : index
      %184 = vector.load %arg9[%c10_26, %c0_27] : memref<36x16xf32, #tpu.memory_space<vmem>>, vector<16x16xf32>
      tpu.vector_store %arg9[%c10_26, %c0_27], %34 {strides = array<i32>} : memref<36x16xf32, #tpu.memory_space<vmem>>, vector<16x16xf32>,
      %c0_28 = arith.constant 0 : index
      %185 = arith.index_cast %arg10 : i32 to index
      %186 = memref.load %arg6[%c0_28, %185] : memref<21x16xf32, #tpu.memory_space<smem>>
      %c0_29 = arith.constant 0 : index
      %c0_30 = arith.constant 0 : index
      %187 = vector.load %arg9[%c0_29, %c0_30] : memref<36x16xf32, #tpu.memory_space<vmem>>, vector<16x16xf32>
      %188 = vector.broadcast %186 : f32 to vector<16x16xf32>
      %189 = arith.mulf %188, %187 : vector<16x16xf32>
      %190 = arith.addf %183, %189 : vector<16x16xf32>
      %c1_31 = arith.constant 1 : index
      %191 = arith.index_cast %arg10 : i32 to index
      %192 = memref.load %arg6[%c1_31, %191] : memref<21x16xf32, #tpu.memory_space<smem>>
      %c1_32 = arith.constant 1 : index
      %c0_33 = arith.constant 0 : index
      %193 = vector.load %arg9[%c1_32, %c0_33] : memref<36x16xf32, #tpu.memory_space<vmem>>, vector<16x16xf32>
      %194 = vector.broadcast %192 : f32 to vector<16x16xf32>
      %195 = arith.mulf %194, %193 : vector<16x16xf32>
      %196 = arith.addf %190, %195 : vector<16x16xf32>
      %c2_34 = arith.constant 2 : index
      %197 = arith.index_cast %arg10 : i32 to index
      %198 = memref.load %arg6[%c2_34, %197] : memref<21x16xf32, #tpu.memory_space<smem>>
      %c2_35 = arith.constant 2 : index
      %c0_36 = arith.constant 0 : index
      %199 = vector.load %arg9[%c2_35, %c0_36] : memref<36x16xf32, #tpu.memory_space<vmem>>, vector<16x16xf32>
      %200 = vector.broadcast %198 : f32 to vector<16x16xf32>
      %201 = arith.mulf %200, %199 : vector<16x16xf32>
      %202 = arith.addf %196, %201 : vector<16x16xf32>
      %c3_37 = arith.constant 3 : index
      %203 = arith.index_cast %arg10 : i32 to index
      %204 = memref.load %arg6[%c3_37, %203] : memref<21x16xf32, #tpu.memory_space<smem>>
      %c3_38 = arith.constant 3 : index
      %c0_39 = arith.constant 0 : index
      %205 = vector.load %arg9[%c3_38, %c0_39] : memref<36x16xf32, #tpu.memory_space<vmem>>, vector<16x16xf32>
      %206 = vector.broadcast %204 : f32 to vector<16x16xf32>
      %207 = arith.mulf %206, %205 : vector<16x16xf32>
      %208 = arith.addf %202, %207 : vector<16x16xf32>
      %c4_40 = arith.constant 4 : index
      %209 = arith.index_cast %arg10 : i32 to index
      %210 = memref.load %arg6[%c4_40, %209] : memref<21x16xf32, #tpu.memory_space<smem>>
      %c4_41 = arith.constant 4 : index
      %c0_42 = arith.constant 0 : index
      %211 = vector.load %arg9[%c4_41, %c0_42] : memref<36x16xf32, #tpu.memory_space<vmem>>, vector<16x16xf32>
      %212 = vector.broadcast %210 : f32 to vector<16x16xf32>
      %213 = arith.mulf %212, %211 : vector<16x16xf32>
      %214 = arith.addf %208, %213 : vector<16x16xf32>
      %c5_43 = arith.constant 5 : index
      %215 = arith.index_cast %arg10 : i32 to index
      %216 = memref.load %arg6[%c5_43, %215] : memref<21x16xf32, #tpu.memory_space<smem>>
      %c5_44 = arith.constant 5 : index
      %c0_45 = arith.constant 0 : index
      %217 = vector.load %arg9[%c5_44, %c0_45] : memref<36x16xf32, #tpu.memory_space<vmem>>, vector<16x16xf32>
      %218 = vector.broadcast %216 : f32 to vector<16x16xf32>
      %219 = arith.mulf %218, %217 : vector<16x16xf32>
      %220 = arith.addf %214, %219 : vector<16x16xf32>
      %c6_46 = arith.constant 6 : index
      %221 = arith.index_cast %arg10 : i32 to index
      %222 = memref.load %arg6[%c6_46, %221] : memref<21x16xf32, #tpu.memory_space<smem>>
      %c6_47 = arith.constant 6 : index
      %c0_48 = arith.constant 0 : index
      %223 = vector.load %arg9[%c6_47, %c0_48] : memref<36x16xf32, #tpu.memory_space<vmem>>, vector<16x16xf32>
      %224 = vector.broadcast %222 : f32 to vector<16x16xf32>
      %225 = arith.mulf %224, %223 : vector<16x16xf32>
      %226 = arith.addf %220, %225 : vector<16x16xf32>
      %c7_49 = arith.constant 7 : index
      %227 = arith.index_cast %arg10 : i32 to index
      %228 = memref.load %arg6[%c7_49, %227] : memref<21x16xf32, #tpu.memory_space<smem>>
      %c7_50 = arith.constant 7 : index
      %c0_51 = arith.constant 0 : index
      %229 = vector.load %arg9[%c7_50, %c0_51] : memref<36x16xf32, #tpu.memory_space<vmem>>, vector<16x16xf32>
      %230 = vector.broadcast %228 : f32 to vector<16x16xf32>
      %231 = arith.mulf %230, %229 : vector<16x16xf32>
      %232 = arith.addf %226, %231 : vector<16x16xf32>
      %c8_52 = arith.constant 8 : index
      %233 = arith.index_cast %arg10 : i32 to index
      %234 = memref.load %arg6[%c8_52, %233] : memref<21x16xf32, #tpu.memory_space<smem>>
      %c8_53 = arith.constant 8 : index
      %c0_54 = arith.constant 0 : index
      %235 = vector.load %arg9[%c8_53, %c0_54] : memref<36x16xf32, #tpu.memory_space<vmem>>, vector<16x16xf32>
      %236 = vector.broadcast %234 : f32 to vector<16x16xf32>
      %237 = arith.mulf %236, %235 : vector<16x16xf32>
      %238 = arith.addf %232, %237 : vector<16x16xf32>
      %c9_55 = arith.constant 9 : index
      %239 = arith.index_cast %arg10 : i32 to index
      %240 = memref.load %arg6[%c9_55, %239] : memref<21x16xf32, #tpu.memory_space<smem>>
      %c9_56 = arith.constant 9 : index
      %c0_57 = arith.constant 0 : index
      %241 = vector.load %arg9[%c9_56, %c0_57] : memref<36x16xf32, #tpu.memory_space<vmem>>, vector<16x16xf32>
      %242 = vector.broadcast %240 : f32 to vector<16x16xf32>
      %243 = arith.mulf %242, %241 : vector<16x16xf32>
      %244 = arith.addf %238, %243 : vector<16x16xf32>
      %c10_58 = arith.constant 10 : index
      %245 = arith.index_cast %arg10 : i32 to index
      %246 = memref.load %arg6[%c10_58, %245] : memref<21x16xf32, #tpu.memory_space<smem>>
      %c10_59 = arith.constant 10 : index
      %c0_60 = arith.constant 0 : index
      %247 = vector.load %arg9[%c10_59, %c0_60] : memref<36x16xf32, #tpu.memory_space<vmem>>, vector<16x16xf32>
      %248 = vector.broadcast %246 : f32 to vector<16x16xf32>
      %249 = arith.mulf %248, %247 : vector<16x16xf32>
      %250 = arith.addf %244, %249 : vector<16x16xf32>
      %c11_61 = arith.constant 11 : index
      %251 = arith.index_cast %arg10 : i32 to index
      %252 = memref.load %arg6[%c11_61, %251] : memref<21x16xf32, #tpu.memory_space<smem>>
      %c11_62 = arith.constant 11 : index
      %c0_63 = arith.constant 0 : index
      %253 = vector.load %arg9[%c11_62, %c0_63] : memref<36x16xf32, #tpu.memory_space<vmem>>, vector<16x16xf32>
      %254 = vector.broadcast %252 : f32 to vector<16x16xf32>
      %255 = arith.mulf %254, %253 : vector<16x16xf32>
      %256 = arith.addf %250, %255 : vector<16x16xf32>
      %c12_64 = arith.constant 12 : index
      %257 = arith.index_cast %arg10 : i32 to index
      %258 = memref.load %arg6[%c12_64, %257] : memref<21x16xf32, #tpu.memory_space<smem>>
      %c12_65 = arith.constant 12 : index
      %c0_66 = arith.constant 0 : index
      %259 = vector.load %arg9[%c12_65, %c0_66] : memref<36x16xf32, #tpu.memory_space<vmem>>, vector<16x16xf32>
      %260 = vector.broadcast %258 : f32 to vector<16x16xf32>
      %261 = arith.mulf %260, %259 : vector<16x16xf32>
      %262 = arith.addf %256, %261 : vector<16x16xf32>
      %c13_67 = arith.constant 13 : index
      %263 = arith.index_cast %arg10 : i32 to index
      %264 = memref.load %arg6[%c13_67, %263] : memref<21x16xf32, #tpu.memory_space<smem>>
      %c13_68 = arith.constant 13 : index
      %c0_69 = arith.constant 0 : index
      %265 = vector.load %arg9[%c13_68, %c0_69] : memref<36x16xf32, #tpu.memory_space<vmem>>, vector<16x16xf32>
      %266 = vector.broadcast %264 : f32 to vector<16x16xf32>
      %267 = arith.mulf %266, %265 : vector<16x16xf32>
      %268 = arith.addf %262, %267 : vector<16x16xf32>
      %c14_70 = arith.constant 14 : index
      %269 = arith.index_cast %arg10 : i32 to index
      %270 = memref.load %arg6[%c14_70, %269] : memref<21x16xf32, #tpu.memory_space<smem>>
      %c14_71 = arith.constant 14 : index
      %c0_72 = arith.constant 0 : index
      %271 = vector.load %arg9[%c14_71, %c0_72] : memref<36x16xf32, #tpu.memory_space<vmem>>, vector<16x16xf32>
      %272 = vector.broadcast %270 : f32 to vector<16x16xf32>
      %273 = arith.mulf %272, %271 : vector<16x16xf32>
      %274 = arith.addf %268, %273 : vector<16x16xf32>
      %c15_73 = arith.constant 15 : index
      %275 = arith.index_cast %arg10 : i32 to index
      %276 = memref.load %arg6[%c15_73, %275] : memref<21x16xf32, #tpu.memory_space<smem>>
      %c15_74 = arith.constant 15 : index
      %c0_75 = arith.constant 0 : index
      %277 = vector.load %arg9[%c15_74, %c0_75] : memref<36x16xf32, #tpu.memory_space<vmem>>, vector<16x16xf32>
      %278 = vector.broadcast %276 : f32 to vector<16x16xf32>
      %279 = arith.mulf %278, %277 : vector<16x16xf32>
      %280 = arith.addf %274, %279 : vector<16x16xf32>
      %c16_76 = arith.constant 16 : index
      %281 = arith.index_cast %arg10 : i32 to index
      %282 = memref.load %arg6[%c16_76, %281] : memref<21x16xf32, #tpu.memory_space<smem>>
      %c16_77 = arith.constant 16 : index
      %c0_78 = arith.constant 0 : index
      %283 = vector.load %arg9[%c16_77, %c0_78] : memref<36x16xf32, #tpu.memory_space<vmem>>, vector<16x16xf32>
      %284 = vector.broadcast %282 : f32 to vector<16x16xf32>
      %285 = arith.mulf %284, %283 : vector<16x16xf32>
      %286 = arith.addf %280, %285 : vector<16x16xf32>
      %c17_79 = arith.constant 17 : index
      %287 = arith.index_cast %arg10 : i32 to index
      %288 = memref.load %arg6[%c17_79, %287] : memref<21x16xf32, #tpu.memory_space<smem>>
      %c17_80 = arith.constant 17 : index
      %c0_81 = arith.constant 0 : index
      %289 = vector.load %arg9[%c17_80, %c0_81] : memref<36x16xf32, #tpu.memory_space<vmem>>, vector<16x16xf32>
      %290 = vector.broadcast %288 : f32 to vector<16x16xf32>
      %291 = arith.mulf %290, %289 : vector<16x16xf32>
      %292 = arith.addf %286, %291 : vector<16x16xf32>
      %c18_82 = arith.constant 18 : index
      %293 = arith.index_cast %arg10 : i32 to index
      %294 = memref.load %arg6[%c18_82, %293] : memref<21x16xf32, #tpu.memory_space<smem>>
      %c18_83 = arith.constant 18 : index
      %c0_84 = arith.constant 0 : index
      %295 = vector.load %arg9[%c18_83, %c0_84] : memref<36x16xf32, #tpu.memory_space<vmem>>, vector<16x16xf32>
      %296 = vector.broadcast %294 : f32 to vector<16x16xf32>
      %297 = arith.mulf %296, %295 : vector<16x16xf32>
      %298 = arith.addf %292, %297 : vector<16x16xf32>
      %c19_85 = arith.constant 19 : index
      %299 = arith.index_cast %arg10 : i32 to index
      %300 = memref.load %arg6[%c19_85, %299] : memref<21x16xf32, #tpu.memory_space<smem>>
      %c19_86 = arith.constant 19 : index
      %c0_87 = arith.constant 0 : index
      %301 = vector.load %arg9[%c19_86, %c0_87] : memref<36x16xf32, #tpu.memory_space<vmem>>, vector<16x16xf32>
      %302 = vector.broadcast %300 : f32 to vector<16x16xf32>
      %303 = arith.mulf %302, %301 : vector<16x16xf32>
      %304 = arith.addf %298, %303 : vector<16x16xf32>
      %c20_88 = arith.constant 20 : index
      %305 = arith.index_cast %arg10 : i32 to index
      %306 = memref.load %arg6[%c20_88, %305] : memref<21x16xf32, #tpu.memory_space<smem>>
      %c20_89 = arith.constant 20 : index
      %c0_90 = arith.constant 0 : index
      %307 = vector.load %arg9[%c20_89, %c0_90] : memref<36x16xf32, #tpu.memory_space<vmem>>, vector<16x16xf32>
      %308 = vector.broadcast %306 : f32 to vector<16x16xf32>
      %309 = arith.mulf %308, %307 : vector<16x16xf32>
      %310 = arith.addf %304, %309 : vector<16x16xf32>
      %311 = arith.index_cast %arg10 : i32 to index
      %312 = memref.load %arg4[%311] : memref<16xf32, #tpu.memory_space<smem>>
      %313 = vector.broadcast %312 : f32 to vector<16x16xf32>
      %314 = arith.addf %310, %313 : vector<16x16xf32>
      %c0_91 = arith.constant 0 : index
      %315 = arith.index_cast %arg10 : i32 to index
      %c0_92 = arith.constant 0 : index
      %c0_93 = arith.constant 0 : index
      %316 = vector.load %arg7[%c0_91, %315, %c0_92, %c0_93] : memref<1x16x16x16xf32, #tpu.memory_space<vmem>>, vector<1x1x16x16xf32>
      %317 = vector.shape_cast %316 : vector<1x1x16x16xf32> to vector<16x16xf32>
      %318 = vector.shape_cast %314 : vector<16x16xf32> to vector<1x1x16x16xf32>
      tpu.vector_store %arg7[%c0_91, %315, %c0_92, %c0_93], %318 {strides = array<i32>} : memref<1x16x16x16xf32, #tpu.memory_space<vmem>>, vector<1x1x16x16xf32>,
    }
    %c16_i32_14 = arith.constant 16 : i32
    return
  }
  func.func @transform_0(%arg0: i32) -> (i32, i32, i32, i32) {
    %c0_i32 = arith.constant 0 : i32
    %c0_i32_0 = arith.constant 0 : i32
    %c0_i32_1 = arith.constant 0 : i32
    %c0_i32_2 = arith.constant 0 : i32
    return %arg0, %c0_i32, %c0_i32_0, %c0_i32_1 : i32, i32, i32, i32
  }
  func.func @transform_1(%arg0: i32) -> i32 {
    %c0_i32 = arith.constant 0 : i32
    %c0_i32_0 = arith.constant 0 : i32
    return %c0_i32 : i32
  }
  func.func @transform_2(%arg0: i32) -> i32 {
    %c0_i32 = arith.constant 0 : i32
    %c0_i32_0 = arith.constant 0 : i32
    return %c0_i32 : i32
  }
  func.func @transform_3(%arg0: i32) -> i32 {
    %c0_i32 = arith.constant 0 : i32
    %c0_i32_0 = arith.constant 0 : i32
    return %c0_i32 : i32
  }
  func.func @transform_4(%arg0: i32) -> (i32, i32) {
    %c0_i32 = arith.constant 0 : i32
    %c0_i32_0 = arith.constant 0 : i32
    %c0_i32_1 = arith.constant 0 : i32
    return %c0_i32, %c0_i32_0 : i32, i32
  }
  func.func @transform_5(%arg0: i32) -> (i32, i32) {
    %c0_i32 = arith.constant 0 : i32
    %c0_i32_0 = arith.constant 0 : i32
    %c0_i32_1 = arith.constant 0 : i32
    return %c0_i32, %c0_i32_0 : i32, i32
  }
  func.func @transform_6(%arg0: i32) -> (i32, i32, i32, i32) {
    %c0_i32 = arith.constant 0 : i32
    %c0_i32_0 = arith.constant 0 : i32
    %c0_i32_1 = arith.constant 0 : i32
    %c0_i32_2 = arith.constant 0 : i32
    return %arg0, %c0_i32, %c0_i32_0, %c0_i32_1 : i32, i32, i32, i32
  }
}

</mosaic_0001>

<bundles_post_ra>
// kernel: tpu_custom_call.1
= control target key start
LH: loop header
LB: loop body
LE: loop exit
PB: predicated region body
PF: predicated region fallthrough
CT: control target
= control target key end

     0   :  { %s2582_s0 = inlined_call_operand.hbm [shape: f32[2,16,16,16], index: 0, kind: input, shape index: {}]   ;;  %s2583_s1 = inlined_call_operand.vmem [shape: f32[16], index: 1, kind: input, shape index: {}]   ;;  %s2584_s2 = inlined_call_operand.vmem [shape: f32[16], index: 2, kind: input, shape index: {}]   ;;  %s2585_s3 = inlined_call_operand.vmem [shape: f32[16], index: 3, kind: input, shape index: {}]   ;;  %s2586_s4 = inlined_call_operand.vmem [shape: f32[21,16], index: 4, kind: input, shape index: {}]   ;;  %s2587_s5 = inlined_call_operand.vmem [shape: f32[21,16], index: 5, kind: input, shape index: {}]   ;;  %s2588_s6 = inlined_call_operand.hbm [shape: f32[2,16,16,16], index: 6, kind: output, shape index: {}]  }
   0x1   :  { %2607 = sst [smem:[#allocation33_spill]] %s2582_s0 }
   0x2   :  { %2608 = sst [smem:[#allocation34_spill]] %s2583_s1 }
   0x3   :  { %2609 = sst [smem:[#allocation35_spill]] %s2584_s2 }
   0x4   :  { %2610 = sst [smem:[#allocation36_spill]] %s2585_s3 }
   0x5   :  { %2611 = sst [smem:[#allocation37_spill]] %s2586_s4 }
   0x6   :  { %2612 = sst [smem:[#allocation38_spill]] %s2587_s5 }
   0x7   :  { %2613 = sst [smem:[#allocation39_spill]] %s2588_s6 }
   0x8   :  { %11 = vsyncpa [#allocation5], 0 }
   0x9   :  { %13 = vsyncpa [#allocation5 + $0x1], 0 }
   0xa   :  { %14 = vsyncpa [#allocation7], 0 }
   0xb   :  { %15 = vsyncpa [#allocation10], 0 }
   0xc   :  { %16 = vsyncpa [#allocation13], 0 }
   0xd   :  { %17 = vsyncpa [#allocation6], 0 }
   0xe   :  { %19 = vsyncpa [#allocation6 + $0x1], 0  ;;  %s1676_s21 = smov 0   ;;  %s1678_s22 = smov 0  }
   0xf   :  { %s1680_s23 = smov 0   ;;  %s1682_s24 = smov 0  }
  0x10 LB: > { %2614 = sst [smem:[#allocation21_spill]] %s1591_s21  ;;  %s2618_s2 = sld [smem:[#allocation35_spill]]  ;;  %s1603_s24 = sphi %s1682_s24, %s2661_s24   ;;  %s1599_s23 = sphi %s1680_s23, %s2664_s23   ;;  %s1595_s22 = sphi %s1678_s22, %s2663_s22   ;;  %s1591_s21 = sphi %s1676_s21, %s2662_s21  }
  0x11   : > { %2615 = sst [smem:[#allocation22_spill]] %s1595_s22  ;;  %s1700_s28 = sadd.s32 4294967295, %s1603_s24  }
  0x12   : > { %2616 = sst [smem:[#allocation23_spill]] %s1599_s23  ;;  %p1196_p0 = scmp.ge.s32.totalorder %s1603_s24, 1 }
  0x13   : > { %2617 = sst [smem:[#allocation24_spill]] %s1603_s24  ;;  %p2589_p1 = scmp.eq.s32.totalorder %s1700_s28, 0 }
  0x14   : > { %2619 = sst [smem:[#allocation25_spill]] %s1700_s28  ;;  %p187_p2 = scmp.lt.s32.totalorder %s1603_s24, 3 }
  0x15   : > { %s2621_s4 = sld [smem:[#allocation37_spill]]  ;;  %s2623_s1 = sld [smem:[#allocation34_spill]] }
  0x16   : > { %s211_s27 = sshll.u32 %s2618_s2, 4  ;;  %p1705_p3 = pnand %p1196_p0, %p187_p2  ;;  %s212_s27 = int_to_ptr.vmem [resolvable:$true] %s211_s27 }
  0x17   : > { %s2624_s3 = sld [smem:[#allocation36_spill]]  ;;  %s1416_s16 = scalar_lea.vmem %s212_s27, 16 }
  0x18   : > { %p1306_p5 = pneg %p1705_p3  ;;  %p1417_p7 = scmp.ne.s32.totalorder %s212_s27, %s1416_s16 }
  0x19   : > { %p1424_p11 = scmp.lt.s32.totalorder %s212_s27, %s212_s27  ;;  %p1425_p12 = scmp.lt.s32.totalorder %s1416_s16, %s1416_s16 }
  0x1a   : > { %p1719_p6 = pnand %p1306_p5, %p2589_p1 }
  0x1b   : > { %s232_s8 = sshll.u32 %s2621_s4, 4  ;;  %s200_s12 = sshll.u32 %s2623_s1, 4  ;;  %s1715_s8 = int_to_ptr.vmem [resolvable:$true] %s232_s8  ;;  %s1726_s12 = int_to_ptr.vmem [resolvable:$true] %s200_s12 }
  0x1c   : > { %p1733_p8 = pneg %p1719_p6  ;;  %p1426_p13 = por %p1425_p12, %p1424_p11 }
  0x1d   : > { %s222_s15 = sshll.u32 %s2624_s3, 4  ;;  %s223_s15 = int_to_ptr.vmem [resolvable:$true] %s222_s15 }
  0x1e   : > { %p1419_p9 = pnand %p1733_p8, %p1417_p7 }
  0x20   : > { %p1420_p10 = pneg %p1419_p9 }
  0x22   : > { %p1427_p0 = pnand %p1426_p13, %p1420_p10 }
  0x24   : > { %1430 = shalt.err (!%p1427_p0)
}
  0x25   : > { %s1609_s18 = smov [#allocation9]   ;;  %s1431_s19 = scalar_lea.vmem %s1715_s8, 384 }
  0x26   : > { %1312 = dma.vmem_to_smem (!%p1719_p6), %s212_s27, 16, %s1609_s18, [#allocation10]  }
  0x27   : > { %p1432_p2 = scmp.ne.s32.totalorder %s1715_s8, %s1431_s19  ;;  %p1439_p7 = scmp.lt.s32.totalorder %s1715_s8, %s1715_s8 }
  0x28   : > { %p1440_p9 = scmp.lt.s32.totalorder %s1431_s19, %s1431_s19 }
  0x29   : > { %p1434_p5 = pnand %p1432_p2, %p1733_p8 }
  0x2a   : > { %p1441_p1 = por %p1440_p9, %p1439_p7 }
  0x2b   : > { %p1435_p4 = pneg %p1434_p5 }
  0x2d   : > { %p1442_p11 = pnand %p1441_p1, %p1435_p4 }
  0x2f   : > { %1445 = shalt.err (!%p1442_p11)
}
  0x30   : > { %s1610_s20 = smov [#allocation12]   ;;  %s1611_s25 = smov 128  }
  0x31   : > { %s1612_s26 = smov 8   ;;  %s1446_s27 = scalar_lea.vmem %s1726_s12, 16 }
  0x32   : > { %1318 = dma.vmem_to_smem (!%p1719_p6), %s1715_s8, 384, %s1610_s20, [#allocation13], %s1611_s25, %s1611_s25, %s1612_s26  }
  0x33   : > { %p1447_p10 = scmp.ne.s32.totalorder %s1726_s12, %s1446_s27  ;;  %p1454_p4 = scmp.lt.s32.totalorder %s1726_s12, %s1726_s12 }
  0x34   : > { %p1455_p13 = scmp.lt.s32.totalorder %s1446_s27, %s1446_s27 }
  0x35   : > { %p1449_p12 = pnand %p1447_p10, %p1733_p8 }
  0x36   : > { %p1456_p0 = por %p1455_p13, %p1454_p4 }
  0x37   : > { %p1450_p1 = pneg %p1449_p12 }
  0x39   : > { %p1457_p2 = pnand %p1456_p0, %p1450_p1 }
  0x3b   : > { %1460 = shalt.err (!%p1457_p2)
}
  0x3c   : > { %s1613_s30 = smov [#allocation8]   ;;  %s1461_s8 = scalar_lea.vmem %s223_s15, 16 }
  0x3d   : > { %1309 = dma.vmem_to_smem (!%p1719_p6), %s1726_s12, 16, %s1613_s30, [#allocation7]  }
  0x3e   : > { %p1462_p5 = scmp.ne.s32.totalorder %s223_s15, %s1461_s8  ;;  %p1469_p11 = scmp.lt.s32.totalorder %s223_s15, %s223_s15 }
  0x3f   : > { %p1470_p10 = scmp.lt.s32.totalorder %s1461_s8, %s1461_s8 }
  0x40   : > { %p1464_p7 = pnand %p1462_p5, %p1733_p8 }
  0x41   : > { %p1471_p12 = por %p1470_p10, %p1469_p11 }
  0x42   : > { %p1465_p9 = pneg %p1464_p7 }
  0x44   : > { %p1472_p1 = pnand %p1471_p12, %p1465_p9 }
  0x46   : > { %1475 = shalt.err (!%p1472_p1)
}
  0x47   : > { %s1614_s11 = smov [#allocation11]   ;;  %s2626_s5 = sld [smem:[#allocation38_spill]] }
  0x48   : > { %1315 = dma.vmem_to_smem (!%p1719_p6), %s223_s15, 16, %s1614_s11, [#allocation10]  }
  0x4d   : > { %s245_s14 = sshll.u32 %s2626_s5, 4  ;;  %s246_s14 = int_to_ptr.vmem [resolvable:$true] %s245_s14 }
  0x4e   : > { %s1476_s16 = scalar_lea.vmem %s246_s14, 384  ;;  %p1484_p2 = scmp.lt.s32.totalorder %s246_s14, %s246_s14 }
  0x4f   : > { %p1477_p4 = scmp.ne.s32.totalorder %s246_s14, %s1476_s16  ;;  %p1485_p5 = scmp.lt.s32.totalorder %s1476_s16, %s1476_s16 }
  0x51   : > { %p1479_p13 = pnand %p1477_p4, %p1733_p8  ;;  %p1486_p7 = por %p1485_p5, %p1484_p2 }
  0x53   : > { %p1480_p0 = pneg %p1479_p13 }
  0x55   : > { %p1487_p9 = pnand %p1486_p7, %p1480_p0 }
  0x57   : > { %1490 = shalt.err (!%p1487_p9)
}
  0x58   : > { %s1615_s18 = smov [#allocation14]   ;;  %s1195_s15 = sadd.s32 4294967294, %s1603_s24  }
  0x59   : > { %1321 = dma.vmem_to_smem (!%p1719_p6), %s246_s14, 384, %s1615_s18, [#allocation13], %s1611_s25, %s1611_s25, %s1612_s26  }
  0x5a   : > { %s1782_s9 = sadd.s32 1, %s1603_s24   ;;  %s32_s17 = sadd.s32 1, %s1599_s23 }
  0x5b   : > { %2627 = sst [smem:[#allocation26_spill]] %s1782_s9  ;;  %s29_s19 = ssub.s32 %s1603_s24, %s1782_s9 }
  0x5c   : > { %p39_p8 = scmp.ne.s32.totalorder %s1599_s23, %s1595_s22  ;;  %p30_p11 = scmp.eq.s32.totalorder %s29_s19, 0 }
  0x5d   : > { %p40_p10 = scmp.eq.s32.totalorder %s1603_s24, 0  ;;  %p45_p12 = scmp.ne.s32.totalorder %s1595_s22, %s1591_s21 }
  0x5e   : > { %p174_p1 = scmp.eq.s32.totalorder %s1700_s28, 1  ;;  %p2629_p13 = scmp.eq.s32.totalorder %s1700_s28, 0 }
  0x5f   : > { %s1794_s20 = scalar_select %p30_p11, %s1599_s23, %s32_s17  }
  0x60   : > { %p41_p4 = por %p40_p10, %p39_p8  ;;  %p1798_p0 = por %p2629_p13, %p45_p12 }
  0x61   : > { %2628 = sst [smem:[#allocation27_spill]] %s1794_s20  ;;  %p1802_p6 = por %p174_p1, %p39_p8 }
  0x62   : > { %s2630_s27 = scalar_select %p1798_p0, 1, 0 }
  0x63   : > { %s2631_s30 = scalar_select %p1802_p6, 1, 0 }
  0x64   : > { %p180_p2 = scmp.eq.s32.totalorder %s1195_s15, 1  ;;  %p1335_p5 = scmp.lt.s32.totalorder %s1603_s24, 2 }
  0x65   : > { %2632 = sst [smem:[#allocation28_spill]] %s2631_s30  ;;  %s259_s7 = sand.u32 1, %s1599_s23  }
  0x66   : > { %p1808_p7 = por %p180_p2, %p45_p12  ;;  %s1203_s8 = sshll.u32 %s259_s7, 8 }
  0x67   : > { %s1240_s11 = sshll.u32 %s1603_s24, 12  ;;  %s2635_s0 = sld [smem:[#allocation33_spill]] }
  0x68   : > { %s2633_s10 = scalar_select %p1808_p7, 1, 0 }
  0x69   : > { %s263_s16 = scalar_lea.vmem [#allocation4], %s1203_s8  ;;  %p1818_p9 = pnand %p1335_p5, %p41_p4 }
  0x6a   : > { %2634 = sst [smem:[#allocation29_spill]] %s2633_s10  ;;  %s270_s18 = sshll.u32 %s263_s16, 4  ;;  %s1822_s18 = int_to_ptr.vmem [resolvable:$true] %s270_s18 }
  0x6b   : > { %s1824_s17 = scalar_lea.sflag [#allocation5], %s259_s7  ;;  %p1493_p11 = pneg %p1818_p9 }
  0x6d   : > { %s1816_s14 = scalar_lea.hbm %s2635_s0, %s1240_s11  ;;  %s1496_s12 = scalar_lea.hbm %s2635_s0, 8192 }
  0x6e   : > { %s1491_s19 = scalar_lea.hbm %s1816_s14, 4096  ;;  %p1497_p1 = scmp.lt.u32.totalorder %s1816_s14, %s2635_s0 }
  0x6f   : > { %p1492_p8 = scmp.ne.s32.totalorder %s1816_s14, %s1491_s19  ;;  %p1498_p4 = scmp.lt.u32.totalorder %s1496_s12, %s1491_s19 }
  0x70   : > { %p1500_p2 = scmp.lt.u32.totalorder %s1491_s19, %s1816_s14 }
  0x71   : > { %p1494_p10 = pnand %p1493_p11, %p1492_p8  ;;  %p1499_p13 = por %p1498_p4, %p1497_p1 }
  0x73   : > { %p1495_p12 = pneg %p1494_p10  ;;  %p1501_p5 = por %p1500_p2, %p1499_p13 }
  0x75   : > { %p1502_p7 = pnand %p1501_p5, %p1495_p12 }
  0x77   : > { %1505 = shalt.err (!%p1502_p7)
}
  0x78   : > { %s1506_s7 = scalar_lea.vmem %s1822_s18, 4096  ;;  %s1616_s8 = smov [#allocation4]  }
  0x79   : > { %p1507_p8 = scmp.ne.s32.totalorder %s1822_s18, %s1506_s7  ;;  %s1511_s11 = sshll.u32 %s1616_s8, 4  ;;  %s1512_s11 = int_to_ptr.vmem [resolvable:$false] %s1511_s11 }
  0x7a   : > { %s1513_s13 = scalar_lea.vmem %s1512_s11, 8192  ;;  %p1514_p0 = scmp.lt.s32.totalorder %s1822_s18, %s1512_s11 }
  0x7b   : > { %p1509_p10 = pnand %p1507_p8, %p1493_p11  ;;  %p1515_p1 = scmp.lt.s32.totalorder %s1513_s13, %s1506_s7 }
  0x7d   : > { %p1510_p6 = pneg %p1509_p10  ;;  %p1516_p4 = por %p1515_p1, %p1514_p0 }
  0x7f   : > { %p1517_p13 = pnand %p1516_p4, %p1510_p6 }
  0x81   : > { %1520 = shalt.err (!%p1517_p13)
}
  0x82   : > { %1325 = dma.hbm_to_vmem [thread:$0]  (!%p1818_p9), %s1816_s14, 4096, %s1822_s18, %s1824_s17, %s1611_s25, %s1611_s25, %s1612_s26  }
  0x83   : > { %282 = sbr.rel (%p1705_p3) target bundleno = 524 (0x20c), region = 44 }
  0x8a   : > { %s1858_s19 = sand.u32 1, %s1595_s22   ;;  %p2639_p0 = scmp.ne.s32.totalorder %s2630_s27, 0 }
  0x8b   : > { %2637 = sst [smem:[#allocation30_spill]] %s1858_s19  ;;  %s1207_s12 = sshll.u32 %s1858_s19, 8 }
  0x8c   : > { %s285_s16 = scalar_lea.sflag [#allocation5], %s1858_s19  ;;  %s1864_s15 = scalar_lea.vmem [#allocation4], %s1207_s12 }
  0x8d   : > { %2638 = sst [smem:[#allocation31_spill]] %s1864_s15 }
  0x8e   : > { %1570 = dma.done.wait (%p2639_p0), %s285_s16, 4096  }
  0x8f   : > { %1572 = vsyncadd (%p2639_p0), %s285_s16, 4294963200  ;;  %p2640_p6 = scmp.eq.s32.totalorder %s1700_s28, 0 }
  0x91   : > { %1574 = dma.done.wait (%p2640_p6), [#allocation7], 16   ;;  %p2641_p3 = pmov %p2640_p6 }
  0x93   : > { %1576 = vsyncadd (%p2641_p3), [#allocation7], 4294967280  ;;  %p2642_p7 = pmov %p2641_p3 }
  0x94   : > { %p2643_p9 = pmov %p2641_p3 }
  0x95   : > { %1578 = dma.done.wait (%p2642_p7), [#allocation10], 32  }
  0x96   : > { %1580 = vsyncadd (%p2643_p9), [#allocation10], 4294967264  ;;  %p2644_p11 = pmov %p2641_p3 }
  0x97   : > { %p2645_p12 = pmov %p2641_p3 }
  0x98   : > { %1582 = dma.done.wait (%p2644_p11), [#allocation13], 768  }
  0x99   : > { %1584 = vsyncadd (%p2645_p12), [#allocation13], 4294966528 }
  0x9a   : > { %313 = sfence }
  0x9b   : > { %vm568_vm0 = vcmask 1047680   ;;  %v1883_v0 = vld [vmem:[%s1864_s15] sm:$0xff]  ;;  %v1886_v1 = vld [vmem:[%s1864_s15 + $0x8] sm:$0xff]  ;;  %v1889_v2 = vld [vmem:[%s1864_s15 + $0x10] sm:$0xff]  ;;  %v1617_v3 = vmov 0.0   ;;  %vm370_vm1 = vcmask 130048  }
  0x9c   : > { %569 = vst.msk [vmem:[#allocation2] sm:$0xff] %vm568_vm0, %v1617_v3  ;;  %570 = vst.msk [vmem:[#allocation2 + $0x8] sm:$0xff] %vm568_vm0, %v1617_v3  ;;  %v1892_v4 = vld [vmem:[%s1864_s15 + $0x18] sm:$0xff]  ;;  %v1895_v5 = vld [vmem:[%s1864_s15 + $0x20] sm:$0xff]  ;;  %vm572_vm2 = vcmask 123904   ;;  %v371_v8 = vsel %vm370_vm1, %v1883_v0, 0.0 }
  0x9d   : > { %v1898_v6 = vld [vmem:[%s1864_s15 + $0x28] sm:$0xff]  ;;  %v1901_v7 = vld [vmem:[%s1864_s15 + $0x30] sm:$0xff]  ;;  %v372_v9 = vsel %vm370_vm1, %v1889_v2, 0.0  ;;  %v374_v10 = vsel %vm370_vm1, %v1895_v5, 0.0  ;;  %571 = vst.msk [vmem:[#allocation3] sm:$0xff] %vm370_vm1, %v1617_v3  ;;  %574 = vst.msk [vmem:[#allocation3 + $0x1a] sm:$0xff] %vm370_vm1, %v1617_v3 }
  0x9e   : > { %573 = vst.msk [vmem:[#allocation3 + $0x8] sm:$0x3] %vm572_vm2, %v1617_v3  ;;  %575 = vst.msk [vmem:[#allocation3 + $0x22] sm:$0x3] %vm572_vm2, %v1617_v3  ;;  %v1912_v11 = vld [vmem:[%s1864_s15 + $0x38] sm:$0xff]  ;;  %v1915_v12 = vld [vmem:[%s1864_s15 + $0x40] sm:$0xff]  ;;  %v373_v13 = vadd.f32 %v372_v9, %v371_v8 }
  0x9f   : > { %v402_v14 = vsel %vm370_vm1, %v1886_v1, 0.0  ;;  %v376_v15 = vsel %vm370_vm1, %v1901_v7, 0.0  ;;  %v403_v16 = vsel %vm370_vm1, %v1892_v4, 0.0  ;;  %v405_v17 = vsel %vm370_vm1, %v1898_v6, 0.0  ;;  %v1926_v18 = vld [vmem:[%s1864_s15 + $0x48] sm:$0xff]  ;;  %v1929_v19 = vld [vmem:[%s1864_s15 + $0x50] sm:$0xff] }
  0xa0   : > { %v375_v20 = vadd.f32 %v374_v10, %v373_v13  ;;  %v404_v21 = vadd.f32 %v403_v16, %v402_v14  ;;  %v378_v22 = vsel %vm370_vm1, %v1915_v12, 0.0  ;;  %v407_v23 = vsel %vm370_vm1, %v1912_v11, 0.0  ;;  %v1936_v24 = vld [vmem:[%s1864_s15 + $0x58] sm:$0xff]  ;;  %v1939_v25 = vld [vmem:[%s1864_s15 + $0x60] sm:$0xff]  ;;  %v1946_v30 = vld [vmem:[%s1864_s15 + $0x68] sm:$0xff]  ;;  %s2150_s29 = scalar_lea.vmem [#allocation15], %s1207_s12 }
  0xa1   : > { %v380_v28 = vsel %vm370_vm1, %v1929_v19, 0.0  ;;  %v409_v29 = vsel %vm370_vm1, %v1926_v18, 0.0  ;;  %v1949_v31 = vld [vmem:[%s1864_s15 + $0x70] sm:$0xff]  ;;  %v382_v34 = vsel %vm370_vm1, %v1939_v25, 0.0  ;;  %v411_v35 = vsel %vm370_vm1, %v1936_v24, 0.0  ;;  %v1956_v36 = vld [vmem:[%s1864_s15 + $0x78] sm:$0xff] }
  0xa2   : > { %v377_v26 = vadd.f32 %v376_v15, %v375_v20  ;;  %v406_v27 = vadd.f32 %v405_v17, %v404_v21  ;;  %v1959_v37 = vld [vmem:[%s1864_s15 + $0x80] sm:$0xff]  ;;  %v384_v40 = vsel %vm370_vm1, %v1949_v31, 0.0  ;;  %v413_v41 = vsel %vm370_vm1, %v1946_v30, 0.0  ;;  %v1966_v42 = vld [vmem:[%s1864_s15 + $0x88] sm:$0xff]  ;;  %v1969_v43 = vld [vmem:[%s1864_s15 + $0x90] sm:$0xff]  ;;  %2646 = sst [smem:[#allocation32_spill]] %s2150_s29 }
  0xa3   : > { %v386_v46 = vsel %vm370_vm1, %v1959_v37, 0.0  ;;  %v415_v47 = vsel %vm370_vm1, %v1956_v36, 0.0  ;;  %v1976_v48 = vld [vmem:[%s1864_s15 + $0x98] sm:$0xff]  ;;  %v1979_v49 = vld [vmem:[%s1864_s15 + $0xa0] sm:$0xff]  ;;  %v388_v52 = vsel %vm370_vm1, %v1969_v43, 0.0  ;;  %v417_v53 = vsel %vm370_vm1, %v1966_v42, 0.0 }
  0xa4   : > { %v379_v32 = vadd.f32 %v378_v22, %v377_v26  ;;  %v408_v33 = vadd.f32 %v407_v23, %v406_v27  ;;  %v1986_v54 = vld [vmem:[%s1864_s15 + $0xa8] sm:$0xff]  ;;  %v1989_v55 = vld [vmem:[%s1864_s15 + $0xb0] sm:$0xff]  ;;  %v390_v58 = vsel %vm370_vm1, %v1979_v49, 0.0  ;;  %v419_v59 = vsel %vm370_vm1, %v1976_v48, 0.0  ;;  %v1996_v60 = vld [vmem:[%s1864_s15 + $0xb8] sm:$0xff]  ;;  %s2152_s25 = smov 0  }
  0xa5   : > { %v1999_v61 = vld [vmem:[%s1864_s15 + $0xc0] sm:$0xff]  ;;  %v392_v3 = vsel %vm370_vm1, %v1989_v55, 0.0  ;;  %v421_v8 = vsel %vm370_vm1, %v1986_v54, 0.0  ;;  %v2006_v9 = vld [vmem:[%s1864_s15 + $0xc8] sm:$0xff]  ;;  %v2009_v10 = vld [vmem:[%s1864_s15 + $0xd0] sm:$0xff]  ;;  %v423_v16 = vsel %vm370_vm1, %v1996_v60, 0.0 }
  0xa6   : > { %v381_v38 = vadd.f32 %v380_v28, %v379_v32  ;;  %v410_v39 = vadd.f32 %v409_v29, %v408_v33  ;;  %v394_v15 = vsel %vm370_vm1, %v1999_v61, 0.0  ;;  %v2016_v21 = vld [vmem:[%s1864_s15 + $0xd8] sm:$0xff]  ;;  %v396_v22 = vsel %vm370_vm1, %v2009_v10, 0.0  ;;  %v2023_v26 = vld [vmem:[%s1864_s15 + $0xe0] sm:$0xff] }
  0xa7   : > { %v425_v23 = vsel %vm370_vm1, %v2006_v9, 0.0  ;;  %v427_v33 = vsel %vm370_vm1, %v2016_v21, 0.0 }
  0xa8   : > { %v383_v44 = vadd.f32 %v382_v34, %v381_v38  ;;  %v412_v45 = vadd.f32 %v411_v35, %v410_v39  ;;  %v2028_v34 = vld [vmem:[%s1864_s15 + $0xe8] sm:$0xff]  ;;  %v398_v35 = vsel %vm370_vm1, %v2023_v26, 0.0  ;;  %v2033_v38 = vld [vmem:[%s1864_s15 + $0xf0] sm:$0xff] }
  0xaa   : > { %v385_v50 = vadd.f32 %v384_v40, %v383_v44  ;;  %v414_v51 = vadd.f32 %v413_v41, %v412_v45  ;;  %v429_v41 = vsel %vm370_vm1, %v2028_v34, 0.0  ;;  %v2038_v44 = vld [vmem:[%s1864_s15 + $0xf8] sm:$0xff]  ;;  %v400_v45 = vsel %vm370_vm1, %v2033_v38, 0.0 }
  0xac   : > { %v387_v56 = vadd.f32 %v386_v46, %v385_v50  ;;  %v416_v57 = vadd.f32 %v415_v47, %v414_v51  ;;  %v431_v50 = vsel %vm370_vm1, %v2038_v44, 0.0 }
  0xae   : > { %v389_v62 = vadd.f32 %v388_v52, %v387_v56  ;;  %v418_v63 = vadd.f32 %v417_v53, %v416_v57 }
  0xb0   : > { %v391_v13 = vadd.f32 %v390_v58, %v389_v62  ;;  %v420_v14 = vadd.f32 %v419_v59, %v418_v63 }
  0xb2   : > { %v393_v17 = vadd.f32 %v392_v3, %v391_v13  ;;  %v422_v20 = vadd.f32 %v421_v8, %v420_v14 }
  0xb4   : > { %v395_v27 = vadd.f32 %v394_v15, %v393_v17  ;;  %v424_v28 = vadd.f32 %v423_v16, %v422_v20 }
  0xb6   : > { %v397_v29 = vadd.f32 %v396_v22, %v395_v27  ;;  %v426_v32 = vadd.f32 %v425_v23, %v424_v28 }
  0xb8   : > { %v428_v39 = vadd.f32 %v427_v33, %v426_v32  ;;  %v399_v40 = vadd.f32 %v398_v35, %v397_v29 }
  0xba   : > { %v430_v46 = vadd.f32 %v429_v41, %v428_v39  ;;  %v401_v47 = vadd.f32 %v400_v45, %v399_v40 }
  0xbc   : > { %v432_v51 = vadd.f32 %v431_v50, %v430_v46  ;;  %v2044_v52 = vmul.f32 0.0625, %v401_v47 }
  0xbe   : > { %v2046_v53 = vmul.f32 0.0625, %v432_v51  ;;  %v436_v56 = vsub.f32 %v1883_v0, %v2044_v52  ;;  %v438_v57 = vsub.f32 %v1889_v2, %v2044_v52  ;;  %v440_v58 = vsub.f32 %v1895_v5, %v2044_v52 }
  0xbf   : > { %v442_v59 = vsub.f32 %v1901_v7, %v2044_v52  ;;  %v444_v63 = vsub.f32 %v1915_v12, %v2044_v52  ;;  %v446_v5 = vsub.f32 %v1929_v19, %v2044_v52 }
  0xc0   : > { %v437_v62 = vsub.f32 %v1886_v1, %v2046_v53  ;;  %v468_v3 = vmul.f32 %v436_v56, %v436_v56  ;;  %v470_v8 = vmul.f32 %v438_v57, %v438_v57  ;;  %v472_v13 = vmul.f32 %v440_v58, %v440_v58 }
  0xc1   : > { %v439_v0 = vsub.f32 %v1892_v4, %v2046_v53  ;;  %v441_v2 = vsub.f32 %v1898_v6, %v2046_v53  ;;  %v474_v14 = vmul.f32 %v442_v59, %v442_v59  ;;  %v443_v7 = vsub.f32 %v1912_v11, %v2046_v53 }
  0xc2   : > { %v448_v1 = vsub.f32 %v1939_v25, %v2044_v52  ;;  %v469_v12 = vmul.f32 %v437_v62, %v437_v62  ;;  %v476_v15 = vmul.f32 %v444_v63, %v444_v63  ;;  %v500_v16 = vsel %vm370_vm1, %v468_v3, 0.0 }
  0xc3   : > { %v501_v17 = vsel %vm370_vm1, %v470_v8, 0.0  ;;  %v503_v4 = vsel %vm370_vm1, %v472_v13, 0.0  ;;  %v445_v6 = vsub.f32 %v1926_v18, %v2046_v53  ;;  %v471_v20 = vmul.f32 %v439_v0, %v439_v0 }
  0xc4   : > { %v473_v19 = vmul.f32 %v441_v2, %v441_v2  ;;  %v502_v22 = vadd.f32 %v501_v17, %v500_v16  ;;  %v450_v11 = vsub.f32 %v1949_v31, %v2044_v52  ;;  %v478_v23 = vmul.f32 %v446_v5, %v446_v5 }
  0xc5   : > { %v505_v25 = vsel %vm370_vm1, %v474_v14, 0.0  ;;  %v447_v27 = vsub.f32 %v1936_v24, %v2046_v53  ;;  %v449_v28 = vsub.f32 %v1946_v30, %v2046_v53  ;;  %v475_v29 = vmul.f32 %v443_v7, %v443_v7 }
  0xc6   : > { %v504_v32 = vadd.f32 %v503_v4, %v502_v22  ;;  %v452_v18 = vsub.f32 %v1959_v37, %v2044_v52  ;;  %v480_v33 = vmul.f32 %v448_v1, %v448_v1  ;;  %v507_v35 = vsel %vm370_vm1, %v476_v15, 0.0 }
  0xc7   : > { %v531_v39 = vsel %vm370_vm1, %v469_v12, 0.0  ;;  %v477_v31 = vmul.f32 %v445_v6, %v445_v6  ;;  %v532_v41 = vsel %vm370_vm1, %v471_v20, 0.0  ;;  %v534_v45 = vsel %vm370_vm1, %v473_v19, 0.0 }
  0xc8   : > { %v506_v40 = vadd.f32 %v505_v25, %v504_v32  ;;  %v454_v24 = vsub.f32 %v1969_v43, %v2044_v52  ;;  %v482_v30 = vmul.f32 %v450_v11, %v450_v11  ;;  %v509_v46 = vsel %vm370_vm1, %v478_v23, 0.0 }
  0xc9   : > { %v533_v47 = vadd.f32 %v532_v41, %v531_v39  ;;  %v451_v37 = vsub.f32 %v1956_v36, %v2046_v53  ;;  %v479_v50 = vmul.f32 %v447_v27, %v447_v27  ;;  %v536_v56 = vsel %vm370_vm1, %v475_v29, 0.0 }
  0xca   : > { %v508_v51 = vadd.f32 %v507_v35, %v506_v40  ;;  %v456_v57 = vsub.f32 %v1979_v49, %v2044_v52  ;;  %v484_v58 = vmul.f32 %v452_v18, %v452_v18  ;;  %v511_v59 = vsel %vm370_vm1, %v480_v33, 0.0 }
  0xcb   : > { %v535_v62 = vadd.f32 %v534_v45, %v533_v47  ;;  %v453_v43 = vsub.f32 %v1966_v42, %v2046_v53  ;;  %v481_v63 = vmul.f32 %v449_v28, %v449_v28  ;;  %v538_v8 = vsel %vm370_vm1, %v477_v31, 0.0 }
  0xcc   : > { %v510_v3 = vadd.f32 %v509_v46, %v508_v51  ;;  %v458_v36 = vsub.f32 %v1989_v55, %v2044_v52  ;;  %v486_v13 = vmul.f32 %v454_v24, %v454_v24  ;;  %v513_v0 = vsel %vm370_vm1, %v482_v30, 0.0 }
  0xcd   : > { %v537_v2 = vadd.f32 %v536_v56, %v535_v62  ;;  %v455_v49 = vsub.f32 %v1976_v48, %v2046_v53  ;;  %v483_v5 = vmul.f32 %v451_v37, %v451_v37  ;;  %v540_v7 = vsel %vm370_vm1, %v479_v50, 0.0 }
  0xce   : > { %v512_v14 = vadd.f32 %v511_v59, %v510_v3  ;;  %v460_v42 = vsub.f32 %v1999_v61, %v2044_v52  ;;  %v488_v1 = vmul.f32 %v456_v57, %v456_v57  ;;  %v515_v12 = vsel %vm370_vm1, %v484_v58, 0.0 }
  0xcf   : > { %v539_v15 = vadd.f32 %v538_v8, %v537_v2  ;;  %v457_v55 = vsub.f32 %v1986_v54, %v2046_v53  ;;  %v485_v16 = vmul.f32 %v453_v43, %v453_v43  ;;  %v542_v4 = vsel %vm370_vm1, %v481_v63, 0.0 }
  0xd0   : > { %v514_v17 = vadd.f32 %v513_v0, %v512_v14  ;;  %v462_v48 = vsub.f32 %v2009_v10, %v2044_v52  ;;  %v490_v6 = vmul.f32 %v458_v36, %v458_v36  ;;  %v517_v20 = vsel %vm370_vm1, %v486_v13, 0.0 }
  0xd1   : > { %v541_v19 = vadd.f32 %v540_v7, %v539_v15  ;;  %v459_v61 = vsub.f32 %v1996_v60, %v2046_v53  ;;  %v487_v22 = vmul.f32 %v455_v49, %v455_v49  ;;  %v544_v23 = vsel %vm370_vm1, %v483_v5, 0.0 }
  0xd2   : > { %v516_v11 = vadd.f32 %v515_v12, %v514_v17  ;;  %v464_v54 = vsub.f32 %v2023_v26, %v2044_v52  ;;  %v492_v25 = vmul.f32 %v460_v42, %v460_v42  ;;  %v519_v27 = vsel %vm370_vm1, %v488_v1, 0.0 }
  0xd3   : > { %v543_v28 = vadd.f32 %v542_v4, %v541_v19  ;;  %v461_v10 = vsub.f32 %v2006_v9, %v2046_v53  ;;  %v489_v29 = vmul.f32 %v457_v55, %v457_v55  ;;  %v546_v18 = vsel %vm370_vm1, %v485_v16, 0.0 }
  0xd4   : > { %v518_v32 = vadd.f32 %v517_v20, %v516_v11  ;;  %v466_v60 = vsub.f32 %v2033_v38, %v2044_v52  ;;  %v494_v33 = vmul.f32 %v462_v48, %v462_v48  ;;  %v521_v35 = vsel %vm370_vm1, %v490_v6, 0.0 }
  0xd5   : > { %v545_v39 = vadd.f32 %v544_v23, %v543_v28  ;;  %v463_v26 = vsub.f32 %v2016_v21, %v2046_v53  ;;  %v491_v31 = vmul.f32 %v459_v61, %v459_v61  ;;  %v548_v41 = vsel %vm370_vm1, %v487_v22, 0.0 }
  0xd6   : > { %v520_v40 = vadd.f32 %v519_v27, %v518_v32  ;;  %v496_v45 = vmul.f32 %v464_v54, %v464_v54  ;;  %v523_v9 = vsel %vm370_vm1, %v492_v25, 0.0  ;;  %v465_v30 = vsub.f32 %v2028_v34, %v2046_v53 }
  0xd7   : > { %v547_v24 = vadd.f32 %v546_v18, %v545_v39  ;;  %v493_v46 = vmul.f32 %v461_v10, %v461_v10  ;;  %v550_v47 = vsel %vm370_vm1, %v489_v29, 0.0  ;;  %v498_v37 = vmul.f32 %v466_v60, %v466_v60 }
  0xd8   : > { %v522_v38 = vadd.f32 %v521_v35, %v520_v40  ;;  %v525_v50 = vsel %vm370_vm1, %v494_v33, 0.0  ;;  %v467_v21 = vsub.f32 %v2038_v44, %v2046_v53  ;;  %v495_v56 = vmul.f32 %v463_v26, %v463_v26 }
  0xd9   : > { %v549_v51 = vadd.f32 %v548_v41, %v547_v24  ;;  %v552_v58 = vsel %vm370_vm1, %v491_v31, 0.0  ;;  %v527_v59 = vsel %vm370_vm1, %v496_v45, 0.0  ;;  %v497_v43 = vmul.f32 %v465_v30, %v465_v30 }
  0xda   : > { %v524_v57 = vadd.f32 %v523_v9, %v522_v38  ;;  %v554_v63 = vsel %vm370_vm1, %v493_v46, 0.0  ;;  %v529_v3 = vsel %vm370_vm1, %v498_v37, 0.0  ;;  %v499_v36 = vmul.f32 %v467_v21, %v467_v21 }
  0xdb   : > { %v551_v62 = vadd.f32 %v550_v47, %v549_v51  ;;  %v556_v0 = vsel %vm370_vm1, %v495_v56, 0.0  ;;  %v558_v49 = vsel %vm370_vm1, %v497_v43, 0.0 }
  0xdc   : > { %v526_v34 = vadd.f32 %v525_v50, %v524_v57  ;;  %v560_v14 = vsel %vm370_vm1, %v499_v36, 0.0 }
  0xdd   : > { %v553_v8 = vadd.f32 %v552_v58, %v551_v62 }
  0xde   : > { %v528_v13 = vadd.f32 %v527_v59, %v526_v34 }
  0xdf   : > { %v555_v44 = vadd.f32 %v554_v63, %v553_v8 }
  0xe0   : > { %v530_v2 = vadd.f32 %v529_v3, %v528_v13 }
  0xe1   : > { %v557_v5 = vadd.f32 %v556_v0, %v555_v44 }
  0xe2   : > { %v562_v7 = vmul.f32 0.0625, %v530_v2 }
  0xe3   : > { %v559_v42 = vadd.f32 %v558_v49, %v557_v5 }
  0xe4   : > { %v564_v1 = vadd.f32 1e-05, %v562_v7 }
  0xe5   : > { %v561_v12 = vadd.f32 %v560_v14, %v559_v42 }
  0xe6   : > { %1412 = vrsqrt.f32 %v564_v1 }
  0xe7   : > { %v563_v15 = vmul.f32 0.0625, %v561_v12 }
  0xe9   : > { %v565_v55 = vadd.f32 1e-05, %v563_v15 }
  0xeb   : > { %1414 = vrsqrt.f32 %v565_v55 }
  0xf0   : > { %v2144_v16 = vpop.eup %1412 }
  0xf5   : > { %v2146_v17 = vpop.eup %1414 }
  0xf6 LB: >> { %s2647_s15 = sld [smem:[#allocation31_spill]]  ;;  %s2592_s14 = sshll.u32 %s1607_s25, 4  ;;  %s1607_s25 = sphi %s2152_s25, %s581_s25  }
  0xf7   : >> { %s582_s26 = sld [smem:[#allocation8 + %s1607_s25]]  ;;  %s1618_s17 = smov 9  }
  0xf8   : >> { %s583_s27 = sld [smem:[#allocation9 + %s1607_s25]]  ;;  %s1619_s7 = smov 10  }
  0xf9   : >> { %s1620_s8 = smov 8   ;;  %s1621_s11 = smov 7  }
  0xfa   : >> { %s1622_s13 = smov 6   ;;  %s1623_s12 = smov 5  }
  0xfb   : >> { %s1624_s16 = smov 4  }
  0xfc   : >> { %s585_s18 = scalar_lea.vmem %s2647_s15, %s2592_s14 }
  0xfd   : >> { %v586_v4 = vld [vmem:[%s585_s18] sm:$0xff]  ;;  %v587_v48 = vld [vmem:[%s585_s18 + $0x8] sm:$0xff]  ;;  %v592_v61 = vstv %s582_s26  ;;  %s1625_s26 = smov 3   ;;  %s1627_s18 = smov 1  }
  0xfe   : >> { %v588_v6 = vsub.f32 %v586_v4, %v2044_v52  ;;  %v589_v20 = vsub.f32 %v587_v48, %v2046_v53  ;;  %v595_v11 = vstv %s583_s27  ;;  %s1626_s27 = smov 2  }
 0x100   : >> { %v590_v19 = vmul.f32 %v2144_v16, %v588_v6  ;;  %v591_v22 = vmul.f32 %v2146_v17, %v589_v20 }
 0x102   : >> { %v593_v23 = vmul.f32 %v592_v61, %v590_v19  ;;  %v594_v54 = vmul.f32 %v592_v61, %v591_v22 }
 0x104   : >> { %v596_v25 = vadd.f32 %v595_v11, %v593_v23  ;;  %v597_v27 = vadd.f32 %v595_v11, %v594_v54 }
 0x106   : >> { %598 = vst.msk [vmem:[#allocation2] sm:$0xff] %vm370_vm1, %v596_v25  ;;  %872 = vst.msk [vmem:[#allocation3 + $0xa] sm:$0xff] %vm370_vm1, %v596_v25 }
 0x107   : >> { %599 = vst.msk [vmem:[#allocation2 + $0x8] sm:$0xff] %vm370_vm1, %v597_v27  ;;  %873 = vst.msk [vmem:[#allocation3 + $0x12] sm:$0xff] %vm370_vm1, %v597_v27 }
 0x10d   : >> { %v2171_v28 = vld [vmem:[#allocation2] sm:$0xff] }
 0x10e   : >> { %612 = vrot.lane.b32.xlu1 %v2171_v28, %s1618_s17  ;;  %602 = vrot.lane.b32.xlu0 %v2171_v28, %s1619_s7  ;;  %v2175_v10 = vld [vmem:[#allocation2 + $0x8] sm:$0xff] }
 0x112   : >> { %614 = vrot.lane.b32.xlu1 %v2175_v10, %s1618_s17  ;;  %604 = vrot.lane.b32.xlu0 %v2175_v10, %s1619_s7  ;;  %s1628_s17 = smov 127   ;;  %s1629_s7 = smov 126  }
 0x116   : >> { %631 = vrot.lane.b32.xlu1 %v2175_v10, %s1620_s8  ;;  %629 = vrot.lane.b32.xlu0 %v2171_v28, %s1620_s8  ;;  %s1630_s8 = smov 125  }
 0x11a   : >> { %644 = vrot.lane.b32.xlu1 %v2175_v10, %s1621_s11  ;;  %642 = vrot.lane.b32.xlu0 %v2171_v28, %s1621_s11  ;;  %s1631_s11 = smov 124  }
 0x11e   : >> { %657 = vrot.lane.b32.xlu1 %v2175_v10, %s1622_s13  ;;  %655 = vrot.lane.b32.xlu0 %v2171_v28, %s1622_s13  ;;  %s1632_s13 = smov 123  }
 0x122   : >> { %670 = vrot.lane.b32.xlu1 %v2175_v10, %s1623_s12  ;;  %668 = vrot.lane.b32.xlu0 %v2171_v28, %s1623_s12  ;;  %s1633_s12 = smov 122  }
 0x126   : >> { %683 = vrot.lane.b32.xlu1 %v2175_v10, %s1624_s16  ;;  %681 = vrot.lane.b32.xlu0 %v2171_v28, %s1624_s16  ;;  %s1634_s16 = smov 121  }
 0x12a   : >> { %696 = vrot.lane.b32.xlu1 %v2175_v10, %s1625_s26  ;;  %694 = vrot.lane.b32.xlu0 %v2171_v28, %s1625_s26  ;;  %s1635_s26 = smov 120  }
 0x12e   : >> { %709 = vrot.lane.b32.xlu1 %v2175_v10, %s1626_s27  ;;  %707 = vrot.lane.b32.xlu0 %v2171_v28, %s1626_s27  ;;  %s1636_s27 = smov 119  }
 0x132   : >> { %722 = vrot.lane.b32.xlu1 %v2175_v10, %s1627_s18  ;;  %720 = vrot.lane.b32.xlu0 %v2171_v28, %s1627_s18  ;;  %s1637_s18 = smov 118  }
 0x136   : >> { %744 = vrot.lane.b32.xlu1 %v2175_v10, %s1628_s17  ;;  %742 = vrot.lane.b32.xlu0 %v2171_v28, %s1628_s17  ;;  %s616_s17 = sshra.s32 %s1607_s25, 7 }
 0x13a   : >> { %757 = vrot.lane.b32.xlu1 %v2175_v10, %s1629_s7  ;;  %755 = vrot.lane.b32.xlu0 %v2171_v28, %s1629_s7  ;;  %s2216_s7 = sshll.u32 %s616_s17, 7 }
 0x13b   : >> { %s1248_s17 = sadd.s32 512, %s2216_s7  ;;  %s1250_s0 = sadd.s32 640, %s2216_s7 }
 0x13c   : >> { %s1252_s2 = sadd.s32 768, %s2216_s7  ;;  %s1254_s4 = sadd.s32 896, %s2216_s7 }
 0x13d   : >> { %s1256_s15 = sadd.s32 1024, %s2216_s7  ;;  %s1260_s23 = sadd.s32 1280, %s2216_s7 }
 0x13e   : >> { %770 = vrot.lane.b32.xlu1 %v2175_v10, %s1630_s8  ;;  %768 = vrot.lane.b32.xlu0 %v2171_v28, %s1630_s8  ;;  %s1242_s8 = sadd.s32 128, %s2216_s7  ;;  %s1276_s6 = sadd.s32 2304, %s2216_s7 }
 0x13f   : >> { %s1278_s28 = sadd.s32 2432, %s2216_s7  ;;  %s1280_s29 = sadd.s32 2560, %s2216_s7 }
 0x142   : >> { %783 = vrot.lane.b32.xlu1 %v2175_v10, %s1631_s11  ;;  %781 = vrot.lane.b32.xlu0 %v2171_v28, %s1631_s11  ;;  %s2220_s11 = sand.u32 127, %s1607_s25 }
 0x143   : >> { %s2243_s1 = sadd.s32 %s1248_s17, %s2220_s11  ;;  %s2250_s3 = sadd.s32 %s1250_s0, %s2220_s11 }
 0x144   : >> { %s2257_s5 = sadd.s32 %s1252_s2, %s2220_s11  ;;  %s2261_s17 = sld [smem:[#allocation12 + %s2250_s3]] }
 0x145   : >> { %s2265_s20 = sadd.s32 %s1254_s4, %s2220_s11  ;;  %s2269_s0 = sld [smem:[#allocation12 + %s2257_s5]] }
 0x146   : >> { %796 = vrot.lane.b32.xlu1 %v2175_v10, %s1632_s13  ;;  %794 = vrot.lane.b32.xlu0 %v2171_v28, %s1632_s13  ;;  %s1244_s13 = sadd.s32 256, %s2216_s7  ;;  %s1258_s2 = sadd.s32 1152, %s2216_s7 }
 0x147   : >> { %s2277_s4 = sld [smem:[#allocation12 + %s2265_s20]] }
 0x14a   : >> { %809 = vrot.lane.b32.xlu1 %v2175_v10, %s1633_s12  ;;  %807 = vrot.lane.b32.xlu0 %v2171_v28, %s1633_s12  ;;  %s2224_s12 = sadd.s32 %s1242_s8, %s2220_s11  ;;  %v676_v44 = vstv %s2261_s17 }
 0x14b   : >> { %v689_v7 = vstv %s2269_s0 }
 0x14d   : >> { %v702_v48 = vstv %s2277_s4 }
 0x14e   : >> { %822 = vrot.lane.b32.xlu1 %v2175_v10, %s1634_s16  ;;  %820 = vrot.lane.b32.xlu0 %v2171_v28, %s1634_s16  ;;  %s1246_s16 = sadd.s32 384, %s2216_s7 }
 0x14f   : >> { %s2236_s14 = sadd.s32 %s1246_s16, %s2220_s11  ;;  %s2253_s16 = sld [smem:[#allocation12 + %s2243_s1]] }
 0x152   : >> { %835 = vrot.lane.b32.xlu1 %v2175_v10, %s1635_s26  ;;  %833 = vrot.lane.b32.xlu0 %v2171_v28, %s1635_s26  ;;  %s2228_s26 = sld [smem:[#allocation12 + %s1607_s25]] }
 0x155   : >> { %v663_v34 = vstv %s2253_s16  ;;  %s1262_s16 = sadd.s32 1408, %s2216_s7 }
 0x156   : >> { %848 = vrot.lane.b32.xlu1 %v2175_v10, %s1636_s27  ;;  %846 = vrot.lane.b32.xlu0 %v2171_v28, %s1636_s27  ;;  %s2231_s27 = sadd.s32 %s1244_s13, %s2220_s11  ;;  %s2246_s13 = sld [smem:[#allocation12 + %s2236_s14]] }
 0x157   : >> { %s2239_s8 = sld [smem:[#allocation12 + %s2231_s27]]  ;;  %s2306_s0 = sadd.s32 %s1262_s16, %s2220_s11 }
 0x158   : >> { %v607_v47 = vstv %s2228_s26  ;;  %s2273_s26 = sadd.s32 %s1256_s15, %s2220_s11  ;;  %s2315_s22 = sld [smem:[#allocation12 + %s2306_s0]] }
 0x159   : >> { %s1268_s16 = sadd.s32 1792, %s2216_s7 }
 0x15a   : >> { %861 = vrot.lane.b32.xlu1 %v2175_v10, %s1637_s18  ;;  %859 = vrot.lane.b32.xlu0 %v2171_v28, %s1637_s18  ;;  %s623_s18 = sld [smem:[#allocation12 + %s2224_s12]] }
 0x15c   : >> { %v650_v59 = vstv %s2246_s13  ;;  %s2292_s13 = sadd.s32 %s1260_s23, %s2220_s11  ;;  %s1264_s23 = sadd.s32 1536, %s2216_s7 }
 0x15d   : >> { %v637_v37 = vstv %s2239_s8  ;;  %s2284_s8 = sld [smem:[#allocation12 + %s2273_s26]]  ;;  %s2311_s4 = sadd.s32 %s1264_s23, %s2220_s11 }
 0x15e   : >> { %s2302_s17 = sld [smem:[#allocation12 + %s2292_s13]]  ;;  %s2326_s23 = sadd.s32 %s1268_s16, %s2220_s11 }
 0x15f   : >> { %s2322_s9 = sld [smem:[#allocation12 + %s2311_s4]]  ;;  %s1274_s16 = sadd.s32 2176, %s2216_s7 }
 0x160   : >> { %v624_v38 = vstv %s623_s18  ;;  %s2280_s18 = sadd.s32 %s1258_s2, %s2220_s11  ;;  %s1266_s2 = sadd.s32 1664, %s2216_s7 }
 0x161   : >> { %s2289_s15 = sld [smem:[#allocation12 + %s2280_s18]]  ;;  %s2351_s30 = sadd.s32 %s1274_s16, %s2220_s11 }
 0x162   : >> { %s2337_s21 = sld [smem:[#allocation12 + %s2326_s23]] }
 0x163   : >> { %v715_v22 = vstv %s2284_s8  ;;  %s2319_s8 = sadd.s32 %s1266_s2, %s2220_s11  ;;  %s1272_s2 = sadd.s32 2048, %s2216_s7 }
 0x164   : >> { %s2330_s24 = sld [smem:[#allocation12 + %s2319_s8]] }
 0x180   : >> { %v613_v29 = vpop.permute.xlu1 %612  ;;  %v603_v32 = vpop.permute.xlu0 %602 }
 0x181   : >> { %v625_v21 = vmul.f32 %v624_v38, %v613_v29  ;;  %v608_v56 = vmul.f32 %v607_v47, %v603_v32  ;;  %v728_v32 = vstv %s2289_s15  ;;  %s1270_s15 = sadd.s32 1920, %s2216_s7  ;;  %s2399_s7 = sld [smem:[#allocation14 + %s2236_s14]] }
 0x182   : >> { %s2334_s10 = sadd.s32 %s1270_s15, %s2220_s11  ;;  %s2412_s14 = sld [smem:[#allocation14 + %s2250_s3]] }
 0x183   : >> { %v627_v8 = vadd.f32 %v625_v21, %v608_v56  ;;  %v750_v21 = vstv %s2315_s22  ;;  %s2347_s15 = sld [smem:[#allocation12 + %s2334_s10]]  ;;  %v763_v56 = vstv %s2322_s9  ;;  %s2361_s22 = sadd.s32 %s1276_s6, %s2220_s11 }
 0x184   : >> { %v615_v18 = vpop.permute.xlu1 %614  ;;  %v605_v60 = vpop.permute.xlu0 %604  ;;  %s2368_s9 = sadd.s32 %s1278_s28, %s2220_s11  ;;  %s2372_s16 = sld [smem:[#allocation12 + %s2361_s22]] }
 0x185   : >> { %v626_v57 = vmul.f32 %v624_v38, %v615_v18  ;;  %v609_v58 = vmul.f32 %v607_v47, %v605_v60  ;;  %s2377_s6 = sld [smem:[#allocation12 + %s2368_s9]] }
 0x186   : >> { %s2426_s3 = sld [smem:[#allocation14 + %s2265_s20]] }
 0x187   : >> { %v628_v36 = vadd.f32 %v626_v57, %v609_v58  ;;  %s2440_s20 = sld [smem:[#allocation14 + %s2280_s18]] }
 0x188   : >> { %v632_v33 = vpop.permute.xlu1 %631  ;;  %v630_v35 = vpop.permute.xlu0 %629  ;;  %s2468_s18 = sld [smem:[#allocation14 + %s2319_s8]] }
 0x189   : >> { %v639_v62 = vmul.f32 %v637_v37, %v632_v33  ;;  %v638_v43 = vmul.f32 %v637_v37, %v630_v35  ;;  %s2501_s8 = sld [smem:[#allocation14 + %s2361_s22]]  ;;  %s2649_s22 = sshll.u32 %s1607_s25, 4 }
 0x18b   : >> { %v641_v2 = vadd.f32 %v639_v62, %v628_v36  ;;  %v640_v49 = vadd.f32 %v638_v43, %v627_v8  ;;  %v776_v43 = vstv %s2330_s24  ;;  %s2384_s24 = sld [smem:[#allocation14 + %s1607_s25]] }
 0x18c   : >> { %v645_v39 = vpop.permute.xlu1 %644  ;;  %v643_v26 = vpop.permute.xlu0 %642 }
 0x18d   : >> { %v652_v13 = vmul.f32 %v650_v59, %v645_v39  ;;  %v651_v0 = vmul.f32 %v650_v59, %v643_v26 }
 0x18f   : >> { %v654_v12 = vadd.f32 %v652_v13, %v641_v2  ;;  %v653_v15 = vadd.f32 %v651_v0, %v640_v49  ;;  %v802_v49 = vstv %s2347_s15  ;;  %s2648_s15 = sld [smem:[#allocation32_spill]] }
 0x190   : >> { %v658_v31 = vpop.permute.xlu1 %657  ;;  %v656_v40 = vpop.permute.xlu0 %655 }
 0x191   : >> { %v665_v5 = vmul.f32 %v663_v34, %v658_v31  ;;  %v664_v14 = vmul.f32 %v663_v34, %v656_v40 }
 0x193   : >> { %v667_v6 = vadd.f32 %v665_v5, %v654_v12  ;;  %v666_v20 = vadd.f32 %v664_v14, %v653_v15 }
 0x194   : >> { %v671_v41 = vpop.permute.xlu1 %670  ;;  %v669_v45 = vpop.permute.xlu0 %668 }
 0x195   : >> { %v678_v55 = vmul.f32 %v676_v44, %v671_v41  ;;  %v677_v4 = vmul.f32 %v676_v44, %v669_v45 }
 0x197   : >> { %v680_v54 = vadd.f32 %v678_v55, %v667_v6  ;;  %v679_v25 = vadd.f32 %v677_v4, %v666_v20 }
 0x198   : >> { %v684_v9 = vpop.permute.xlu1 %683  ;;  %v682_v24 = vpop.permute.xlu0 %681 }
 0x199   : >> { %v691_v19 = vmul.f32 %v689_v7, %v684_v9  ;;  %v690_v61 = vmul.f32 %v689_v7, %v682_v24  ;;  %v737_v9 = vstv %s2302_s17  ;;  %s2343_s17 = sadd.s32 %s1272_s2, %s2220_s11  ;;  %s2365_s2 = sld [smem:[#allocation12 + %s2351_s30]] }
 0x19a   : >> { %s2355_s19 = sld [smem:[#allocation12 + %s2343_s17]] }
 0x19b   : >> { %v693_v18 = vadd.f32 %v691_v19, %v680_v54  ;;  %v692_v60 = vadd.f32 %v690_v61, %v679_v25 }
 0x19c   : >> { %v697_v30 = vpop.permute.xlu1 %696  ;;  %v695_v46 = vpop.permute.xlu0 %694 }
 0x19d   : >> { %v704_v27 = vmul.f32 %v702_v48, %v697_v30  ;;  %v703_v29 = vmul.f32 %v702_v48, %v695_v46 }
 0x19f   : >> { %v706_v31 = vadd.f32 %v704_v27, %v693_v18  ;;  %v705_v40 = vadd.f32 %v703_v29, %v692_v60  ;;  %v828_v20 = vstv %s2365_s2  ;;  %v854_v60 = vstv %s2377_s6  ;;  %s1046_s2 = scalar_lea.vmem %s2648_s15, %s2649_s22 }
 0x1a0   : >> { %v710_v50 = vpop.permute.xlu1 %709  ;;  %v708_v51 = vpop.permute.xlu0 %707 }
 0x1a1   : >> { %v717_v33 = vmul.f32 %v715_v22, %v710_v50  ;;  %v716_v35 = vmul.f32 %v715_v22, %v708_v51  ;;  %v739_v50 = vmul.f32 %v737_v9, %v2175_v10  ;;  %v738_v51 = vmul.f32 %v737_v9, %v2171_v28 }
 0x1a3   : >> { %v719_v24 = vadd.f32 %v717_v33, %v706_v31  ;;  %v718_v30 = vadd.f32 %v716_v35, %v705_v40 }
 0x1a4   : >> { %v723_v63 = vpop.permute.xlu1 %722  ;;  %v721_v3 = vpop.permute.xlu0 %720 }
 0x1a5   : >> { %v730_v41 = vmul.f32 %v728_v32, %v723_v63  ;;  %v729_v45 = vmul.f32 %v728_v32, %v721_v3  ;;  %v789_v3 = vstv %s2337_s21  ;;  %s2380_s21 = sadd.s32 %s1280_s29, %s2220_s11  ;;  %s2391_s29 = sld [smem:[#allocation14 + %s2224_s12]] }
 0x1a6   : >> { %s2388_s28 = sld [smem:[#allocation12 + %s2380_s21]] }
 0x1a7   : >> { %v732_v47 = vadd.f32 %v730_v41, %v719_v24  ;;  %v731_v37 = vadd.f32 %v729_v45, %v718_v30  ;;  %v877_v41 = vstv %s2384_s24  ;;  %v2402_v45 = vld [vmem:[#allocation3 + $0x8] sm:$0xff]  ;;  %s2405_s11 = sld [smem:[#allocation14 + %s2243_s1]] }
 0x1a8   : >> { %v2296_v42 = vpop.permute.xlu1 %744  ;;  %v2298_v1 = vpop.permute.xlu0 %742  ;;  %s2419_s1 = sld [smem:[#allocation14 + %s2257_s5]] }
 0x1a9   : >> { %v741_v28 = vadd.f32 %v739_v50, %v732_v47  ;;  %v752_v10 = vmul.f32 %v750_v21, %v2296_v42  ;;  %v740_v59 = vadd.f32 %v738_v51, %v731_v37  ;;  %v751_v62 = vmul.f32 %v750_v21, %v2298_v1  ;;  %v883_v51 = vld [vmem:[#allocation3 + $0x1] sm:$0xff]  ;;  %v2408_v21 = vld [vmem:[#allocation3 + $0x9] sm:$0xff]  ;;  %s2433_s5 = sld [smem:[#allocation14 + %s2273_s26]] }
 0x1aa   : >> { %v815_v1 = vstv %s2355_s19  ;;  %s2395_s19 = sld [smem:[#allocation14 + %s2231_s27]] }
 0x1ab   : >> { %v754_v13 = vadd.f32 %v752_v10, %v741_v28  ;;  %v753_v0 = vadd.f32 %v751_v62, %v740_v59  ;;  %s2447_s12 = sld [smem:[#allocation14 + %s2292_s13]] }
 0x1ac   : >> { %v758_v11 = vpop.permute.xlu1 %757  ;;  %v756_v23 = vpop.permute.xlu0 %755  ;;  %v867_v47 = vstv %s2388_s28  ;;  %s2454_s27 = sld [smem:[#allocation14 + %s2306_s0]] }
 0x1ad   : >> { %v765_v34 = vmul.f32 %v763_v56, %v758_v11  ;;  %v764_v63 = vmul.f32 %v763_v56, %v756_v23  ;;  %v841_v23 = vstv %s2372_s16  ;;  %v885_v56 = vstv %s2391_s29  ;;  %s2461_s26 = sld [smem:[#allocation14 + %s2311_s4]] }
 0x1ae   : >> { %s2476_s13 = sld [smem:[#allocation14 + %s2326_s23]] }
 0x1af   : >> { %v767_v5 = vadd.f32 %v765_v34, %v754_v13  ;;  %v766_v14 = vadd.f32 %v764_v63, %v753_v0  ;;  %v891_v63 = vld [vmem:[#allocation3 + $0x2] sm:$0xff]  ;;  %v887_v13 = vmul.f32 %v885_v56, %v2408_v21  ;;  %s2484_s0 = sld [smem:[#allocation14 + %s2334_s10]] }
 0x1b0   : >> { %v771_v39 = vpop.permute.xlu1 %770  ;;  %v769_v26 = vpop.permute.xlu0 %768  ;;  %s2490_s4 = sld [smem:[#allocation14 + %s2343_s17]] }
 0x1b1   : >> { %v778_v44 = vmul.f32 %v776_v43, %v771_v39  ;;  %v777_v2 = vmul.f32 %v776_v43, %v769_v26  ;;  %s2496_s10 = sld [smem:[#allocation14 + %s2351_s30]] }
 0x1b2   : >> { %s2506_s30 = sld [smem:[#allocation14 + %s2368_s9]] }
 0x1b3   : >> { %v780_v55 = vadd.f32 %v778_v44, %v767_v5  ;;  %v779_v4 = vadd.f32 %v777_v2, %v766_v14  ;;  %v899_v2 = vld [vmem:[#allocation3 + $0x3] sm:$0xff]  ;;  %v901_v5 = vstv %s2399_s7  ;;  %s2511_s23 = sld [smem:[#allocation14 + %s2380_s21]] }
 0x1b4   : >> { %v784_v46 = vpop.permute.xlu1 %783  ;;  %v782_v38 = vpop.permute.xlu0 %781  ;;  %s1042_s17 = sld [smem:[#allocation11 + %s1607_s25]]  ;;  %s581_s25 = sadd.s32 1, %s1607_s25  }
 0x1b5   : >> { %v791_v7 = vmul.f32 %v789_v3, %v784_v46  ;;  %v790_v42 = vmul.f32 %v789_v3, %v782_v38  ;;  %v875_v38 = vld [vmem:[#allocation3] sm:$0xff]  ;;  %v2415_v3 = vld [vmem:[#allocation3 + $0xa] sm:$0xff]  ;;  %p578_p2 = scmp.ge.s32.totalorder %s581_s25, 16  }
 0x1b6   : >> { %v878_v28 = vmul.f32 %v877_v41, %v875_v38  ;;  %s2650_s9 = sld [smem:[#allocation25_spill]] (%p578_p2)  ;;  %s2651_s16 = sld [smem:[#allocation32_spill]] (%p578_p2) }
 0x1b7   : >> { %v793_v19 = vadd.f32 %v791_v7, %v780_v55  ;;  %v792_v61 = vadd.f32 %v790_v42, %v779_v4  ;;  %v909_v55 = vstv %s2405_s11  ;;  %v902_v4 = vmul.f32 %v901_v5, %v899_v2  ;;  %s2652_s6 = sld [smem:[#allocation30_spill]] (%p578_p2)  ;;  %s2653_s21 = sld [smem:[#allocation28_spill]] (%p578_p2) }
 0x1b8   : >> { %v797_v57 = vpop.permute.xlu1 %796  ;;  %v795_v58 = vpop.permute.xlu0 %794  ;;  %s1638_s25 = smov (%p578_p2), [#allocation15]  }
 0x1b9   : >> { %v804_v48 = vmul.f32 %v802_v49, %v797_v57  ;;  %v803_v6 = vmul.f32 %v802_v49, %v795_v58  ;;  %v879_v57 = vmul.f32 %v2402_v45, %v877_v41  ;;  %v2422_v49 = vld [vmem:[#allocation3 + $0xb] sm:$0xff] }
 0x1bb   : >> { %v806_v27 = vadd.f32 %v804_v48, %v793_v19  ;;  %v805_v29 = vadd.f32 %v803_v6, %v792_v61  ;;  %v903_v48 = vmul.f32 %v901_v5, %v2422_v49  ;;  %v915_v19 = vld [vmem:[#allocation3 + $0x5] sm:$0xff]  ;;  %v2436_v61 = vld [vmem:[#allocation3 + $0xd] sm:$0xff] }
 0x1bc   : >> { %v810_v8 = vpop.permute.xlu1 %809  ;;  %v808_v36 = vpop.permute.xlu0 %807  ;;  %v972_v5 = vld [vmem:[#allocation3 + $0x14] sm:$0xff]  ;;  %s1281_s24 = sshll.u32 (%p578_p2), %s2650_s9, 12  ;;  %s1063_s11 = sshll.u32 (%p578_p2), %s2651_s16, 4  ;;  %s2538_s11 = int_to_ptr.vmem [resolvable:$true] %s1063_s11 }
 0x1bd   : >> { %v817_v22 = vmul.f32 %v815_v1, %v810_v8  ;;  %v816_v11 = vmul.f32 %v815_v1, %v808_v36  ;;  %v893_v8 = vstv %s2395_s19  ;;  %v886_v36 = vmul.f32 %v885_v56, %v883_v51  ;;  %v2464_v51 = vld [vmem:[#allocation3 + $0x11] sm:$0xff]  ;;  %s2654_s19 = sld [smem:[#allocation39_spill]] (%p578_p2)  ;;  %p2655_p8 = scmp.ne.s32.totalorder (%p578_p2), %s2653_s21, 0 }
 0x1be   : >> { %v894_v14 = vmul.f32 %v893_v8, %v891_v63  ;;  %v895_v7 = vmul.f32 %v893_v8, %v2415_v3  ;;  %v949_v56 = vstv %s2440_s20 }
 0x1bf   : >> { %v819_v33 = vadd.f32 %v817_v22, %v806_v27  ;;  %v818_v35 = vadd.f32 %v816_v11, %v805_v29  ;;  %v917_v22 = vstv %s2412_s14  ;;  %v923_v27 = vld [vmem:[#allocation3 + $0x6] sm:$0xff]  ;;  %v2443_v29 = vld [vmem:[#allocation3 + $0xe] sm:$0xff]  ;;  %s1050_s14 = scalar_lea.sflag (%p578_p2), [#allocation6], %s2652_s6 }
 0x1c0   : >> { %v823_v12 = vpop.permute.xlu1 %822  ;;  %v821_v15 = vpop.permute.xlu0 %820 }
 0x1c1   : >> { %v830_v32 = vmul.f32 %v828_v20, %v823_v12  ;;  %v829_v18 = vmul.f32 %v828_v20, %v821_v15  ;;  %v907_v12 = vld [vmem:[#allocation3 + $0x4] sm:$0xff]  ;;  %v2429_v15 = vld [vmem:[#allocation3 + $0xc] sm:$0xff] }
 0x1c2   : >> { %v910_v11 = vmul.f32 %v909_v55, %v907_v12  ;;  %v980_v12 = vld [vmem:[#allocation3 + $0x15] sm:$0xff] }
 0x1c3   : >> { %v832_v9 = vadd.f32 %v830_v32, %v819_v33  ;;  %v831_v24 = vadd.f32 %v829_v18, %v818_v35  ;;  %v925_v32 = vstv %s2419_s1  ;;  %v918_v18 = vmul.f32 %v917_v22, %v915_v19  ;;  %s2535_s7 = scalar_lea.hbm (%p578_p2), %s2654_s19, %s1281_s24  ;;  %s1521_s1 = scalar_lea.vmem (%p578_p2), %s2538_s11, 4096 }
 0x1c4   : >> { %v836_v54 = vpop.permute.xlu1 %835  ;;  %v834_v25 = vpop.permute.xlu0 %833  ;;  %v927_v41 = vmul.f32 %v925_v32, %v2443_v29  ;;  %v989_v19 = vstv %s2476_s13  ;;  %p1522_p5 = scmp.ne.s32.totalorder (%p578_p2), %s2538_s11, %s1521_s1 }
 0x1c5   : >> { %v843_v39 = vmul.f32 %v841_v23, %v836_v54  ;;  %v842_v26 = vmul.f32 %v841_v23, %v834_v25  ;;  %v911_v23 = vmul.f32 %v909_v55, %v2429_v15 }
 0x1c6   : > { %p1523_p10 = pnand (%p578_p2), %p1522_p5, %p2655_p8 }
 0x1c7   : >> { %v845_v37 = vadd.f32 %v843_v39, %v832_v9  ;;  %v844_v50 = vadd.f32 %v842_v26, %v831_v24  ;;  %v931_v39 = vld [vmem:[#allocation3 + $0x7] sm:$0xff]  ;;  %v2450_v26 = vld [vmem:[#allocation3 + $0xf] sm:$0xff] }
 0x1c8   : >> { %v849_v31 = vpop.permute.xlu1 %848  ;;  %v847_v40 = vpop.permute.xlu0 %846  ;;  %p1524_p1 = pneg (%p578_p2), %p1523_p10 }
 0x1c9   : >> { %v856_v30 = vmul.f32 %v854_v60, %v849_v31  ;;  %v855_v46 = vmul.f32 %v854_v60, %v847_v40  ;;  %v919_v60 = vmul.f32 %v917_v22, %v2436_v61  ;;  %v933_v31 = vstv %s2426_s3  ;;  %s1525_s3 = sshll.u32 (%p578_p2), %s1638_s25, 4  ;;  %s1526_s3 = int_to_ptr.vmem [resolvable:$false] %s1525_s3 }
 0x1ca   : >> { %v926_v40 = vmul.f32 %v925_v32, %v923_v27  ;;  %v934_v38 = vmul.f32 %v933_v31, %v931_v39  ;;  %p1528_p4 = scmp.lt.s32.totalorder (%p578_p2), %s2538_s11, %s1526_s3 }
 0x1cb   : >> { %v858_v59 = vadd.f32 %v856_v30, %v845_v37  ;;  %v857_v62 = vadd.f32 %v855_v46, %v844_v50  ;;  %v2457_v30 = vld [vmem:[#allocation3 + $0x10] sm:$0xff]  ;;  %v941_v46 = vstv %s2433_s5  ;;  %s1527_s5 = scalar_lea.vmem (%p578_p2), %s1526_s3, 8192 }
 0x1cc   : >> { %v862_v58 = vpop.permute.xlu1 %861  ;;  %v860_v10 = vpop.permute.xlu0 %859  ;;  %p1529_p13 = scmp.lt.s32.totalorder (%p578_p2), %s1527_s5, %s1521_s1 }
 0x1cd   : >> { %v869_v43 = vmul.f32 %v867_v47, %v862_v58  ;;  %v868_v34 = vmul.f32 %v867_v47, %v860_v10  ;;  %v935_v47 = vmul.f32 %v933_v31, %v2450_v26  ;;  %v943_v58 = vmul.f32 %v941_v46, %v2457_v30 }
 0x1ce   : > { %p1530_p0 = por (%p578_p2), %p1529_p13, %p1528_p4 }
 0x1cf   : >> { %v871_v0 = vadd.f32 %v869_v43, %v858_v59  ;;  %v870_v44 = vadd.f32 %v868_v34, %v857_v62  ;;  %v2472_v59 = vld [vmem:[#allocation3 + $0x12] sm:$0xff]  ;;  %v957_v62 = vstv %s2447_s12  ;;  %v950_v43 = vmul.f32 %v949_v56, %v2408_v21 }
 0x1d0   : >> { %v951_v34 = vmul.f32 %v949_v56, %v2464_v51  ;;  %v973_v21 = vstv %s2461_s26  ;;  %p1531_p6 = pnand (%p578_p2), %p1530_p0, %p1524_p1 }
 0x1d1   : >> { %v881_v42 = vadd.f32 %v879_v57, %v871_v0  ;;  %v880_v1 = vadd.f32 %v878_v28, %v870_v44  ;;  %v942_v57 = vmul.f32 %v941_v46, %v2402_v45  ;;  %v965_v45 = vstv %s2454_s27 }
 0x1d2   : >> { %v959_v0 = vmul.f32 %v957_v62, %v2472_v59  ;;  %v974_v55 = vmul.f32 %v973_v21, %v2429_v15  ;;  %v990_v15 = vmul.f32 %v989_v19, %v2443_v29 }
 0x1d3   : >> { %v889_v6 = vadd.f32 %v887_v13, %v881_v42  ;;  %v888_v20 = vadd.f32 %v886_v36, %v880_v1  ;;  %v2480_v36 = vld [vmem:[#allocation3 + $0x13] sm:$0xff]  ;;  %v958_v13 = vmul.f32 %v957_v62, %v2415_v3  ;;  %v981_v3 = vstv %s2468_s18 }
 0x1d4   : >> { %v983_v22 = vmul.f32 %v981_v3, %v980_v12 }
 0x1d5   : >> { %v897_v54 = vadd.f32 %v895_v7, %v889_v6  ;;  %v896_v25 = vadd.f32 %v894_v14, %v888_v20  ;;  %v966_v14 = vmul.f32 %v965_v45, %v2422_v49  ;;  %v967_v7 = vmul.f32 %v965_v45, %v2480_v36  ;;  %v988_v20 = vld [vmem:[#allocation3 + $0x16] sm:$0xff] }
 0x1d6   : >> { %v982_v49 = vmul.f32 %v981_v3, %v2436_v61  ;;  %v991_v27 = vmul.f32 %v989_v19, %v988_v20 }
 0x1d7   : >> { %v905_v33 = vadd.f32 %v903_v48, %v897_v54  ;;  %v904_v35 = vadd.f32 %v902_v4, %v896_v25  ;;  %v975_v4 = vmul.f32 %v973_v21, %v972_v5  ;;  %v996_v54 = vld [vmem:[#allocation3 + $0x17] sm:$0xff]  ;;  %v997_v25 = vstv %s2484_s0 }
 0x1d8   : >> { %v998_v61 = vmul.f32 %v997_v25, %v2450_v26 }
 0x1d9   : >> { %v913_v9 = vadd.f32 %v911_v23, %v905_v33  ;;  %v912_v24 = vadd.f32 %v910_v11, %v904_v35  ;;  %v1005_v33 = vstv %s2490_s4  ;;  %v999_v35 = vmul.f32 %v997_v25, %v996_v54 }
 0x1db   : >> { %v921_v37 = vadd.f32 %v919_v60, %v913_v9  ;;  %v920_v50 = vadd.f32 %v918_v18, %v912_v24  ;;  %v1004_v60 = vld [vmem:[#allocation3 + $0x18] sm:$0xff]  ;;  %v1006_v9 = vmul.f32 %v1005_v33, %v2457_v30 }
 0x1dc   : >> { %v1007_v29 = vmul.f32 %v1005_v33, %v1004_v60  ;;  %v1036_v30 = vld [vmem:[#allocation3 + $0x1c] sm:$0xff] }
 0x1dd   : >> { %v929_v28 = vadd.f32 %v927_v41, %v921_v37  ;;  %v928_v10 = vadd.f32 %v926_v40, %v920_v50  ;;  %v1012_v40 = vld [vmem:[#allocation3 + $0x19] sm:$0xff]  ;;  %v1013_v41 = vstv %s2496_s10 }
 0x1de   : >> { %v1014_v37 = vmul.f32 %v1013_v41, %v2464_v51  ;;  %v1015_v50 = vmul.f32 %v1013_v41, %v1012_v40 }
 0x1df   : >> { %v937_v63 = vadd.f32 %v935_v47, %v929_v28  ;;  %v936_v8 = vadd.f32 %v934_v38, %v928_v10  ;;  %v1020_v38 = vld [vmem:[#allocation3 + $0x1a] sm:$0xff]  ;;  %v1021_v47 = vstv %s2501_s8 }
 0x1e0   : >> { %v1022_v28 = vmul.f32 %v1021_v47, %v2472_v59  ;;  %v1023_v10 = vmul.f32 %v1021_v47, %v1020_v38 }
 0x1e1   : >> { %v945_v44 = vadd.f32 %v943_v58, %v937_v63  ;;  %v944_v2 = vadd.f32 %v942_v57, %v936_v8  ;;  %v1028_v57 = vld [vmem:[#allocation3 + $0x1b] sm:$0xff]  ;;  %v1029_v58 = vstv %s2506_s30 }
 0x1e2   : >> { %v1030_v63 = vmul.f32 %v1029_v58, %v2480_v36  ;;  %v1031_v8 = vmul.f32 %v1029_v58, %v1028_v57 }
 0x1e3   : >> { %v953_v42 = vadd.f32 %v951_v34, %v945_v44  ;;  %v952_v1 = vadd.f32 %v950_v43, %v944_v2  ;;  %v1037_v34 = vstv %s2511_s23 }
 0x1e5   : >> { %v961_v48 = vadd.f32 %v959_v0, %v953_v42  ;;  %v960_v6 = vadd.f32 %v958_v13, %v952_v1  ;;  %v1038_v13 = vmul.f32 %v1037_v34, %v972_v5  ;;  %v1039_v0 = vmul.f32 %v1037_v34, %v1036_v30 }
 0x1e7   : >> { %v969_v11 = vadd.f32 %v967_v7, %v961_v48  ;;  %v968_v23 = vadd.f32 %v966_v14, %v960_v6  ;;  %v1043_v7 = vstv %s1042_s17 }
 0x1e9   : >> { %v977_v32 = vadd.f32 %v975_v4, %v969_v11  ;;  %v976_v18 = vadd.f32 %v974_v55, %v968_v23 }
 0x1eb   : >> { %v985_v39 = vadd.f32 %v983_v22, %v977_v32  ;;  %v984_v31 = vadd.f32 %v982_v49, %v976_v18 }
 0x1ed   : >> { %v993_v24 = vadd.f32 %v991_v27, %v985_v39  ;;  %v992_v46 = vadd.f32 %v990_v15, %v984_v31 }
 0x1ef   : >> { %v1001_v56 = vadd.f32 %v999_v35, %v993_v24  ;;  %v1000_v26 = vadd.f32 %v998_v61, %v992_v46 }
 0x1f1   : >> { %v1009_v62 = vadd.f32 %v1007_v29, %v1001_v56  ;;  %v1008_v43 = vadd.f32 %v1006_v9, %v1000_v26 }
 0x1f3   : >> { %v1017_v45 = vadd.f32 %v1015_v50, %v1009_v62  ;;  %v1016_v51 = vadd.f32 %v1014_v37, %v1008_v43 }
 0x1f5   : >> { %v1025_v44 = vadd.f32 %v1023_v10, %v1017_v45  ;;  %v1024_v2 = vadd.f32 %v1022_v28, %v1016_v51 }
 0x1f7   : >> { %v1033_v21 = vadd.f32 %v1031_v8, %v1025_v44  ;;  %v1032_v14 = vadd.f32 %v1030_v63, %v1024_v2  ;;  %580 = sbr.rel (!%p578_p2) target bundleno = 246 (0xf6), region = 119 }
 0x1f9   : >> { %v1041_v59 = vadd.f32 %v1039_v0, %v1033_v21  ;;  %v1040_v42 = vadd.f32 %v1038_v13, %v1032_v14 }
 0x1fb   : >> { %v1045_v1 = vadd.f32 %v1043_v7, %v1041_v59  ;;  %v1044_v12 = vadd.f32 %v1043_v7, %v1040_v42 }
 0x1fd   : >> { %1048 = vst.msk [vmem:[%s1046_s2 + $0x8] sm:$0xff] %vm370_vm1, %v1045_v1  ;;  %1047 = vst.msk [vmem:[%s1046_s2] sm:$0xff] %vm370_vm1, %v1044_v12 }
 0x1fe   : > { %1534 = shalt.err (!%p1531_p6)
}
 0x1ff   : > { %s1535_s20 = scalar_lea.hbm %s2535_s7, 4096  ;;  %s1539_s26 = scalar_lea.hbm %s2654_s19, 8192 }
 0x200   : > { %p1536_p3 = scmp.ne.s32.totalorder %s2535_s7, %s1535_s20  ;;  %p1540_p11 = scmp.lt.u32.totalorder %s2535_s7, %s2654_s19 }
 0x201   : > { %p1541_p12 = scmp.lt.u32.totalorder %s1539_s26, %s1535_s20  ;;  %p1543_p5 = scmp.lt.u32.totalorder %s1535_s20, %s2535_s7 }
 0x202   : > { %p1537_p7 = pnand %p1536_p3, %p2655_p8 }
 0x203   : > { %p1542_p2 = por %p1541_p12, %p1540_p11 }
 0x204   : > { %p1538_p9 = pneg %p1537_p7 }
 0x205   : > { %p1544_p10 = por %p1543_p5, %p1542_p2 }
 0x207   : > { %p1545_p1 = pnand %p1544_p10, %p1538_p9 }
 0x209   : > { %1548 = shalt.err (!%p1545_p1)
}
 0x20a   : > { %s1639_s0 = smov 128   ;;  %s1640_s4 = smov 8  }
 0x20b   : > { %1304 = dma.vmem_to_hbm [thread:$0]  (%p2655_p8), %s2538_s11, 4096, %s2535_s7, %s1050_s14, %s1639_s0, %s1639_s0, %s1640_s4  }
 0x20c PF: > { %s2656_s10 = sld [smem:[#allocation21_spill]]  ;;  %s2657_s8 = sld [smem:[#allocation29_spill]] }
 0x20d   : > { %s2658_s30 = sld [smem:[#allocation24_spill]] }
 0x212   : > { %s1078_s23 = sand.u32 1, %s2656_s10   ;;  %p2659_p4 = scmp.ne.s32.totalorder %s2657_s8, 0 }
 0x213   : > { %p2660_p13 = scmp.ge.s32.totalorder %s2658_s30, 2  ;;  %s1079_s17 = scalar_lea.sflag [#allocation6], %s1078_s23 }
 0x215   : > { %p1327_p0 = pnand %p2660_p13, %p2659_p4 }
 0x217   : > { %1586 = dma.done.wait (!%p1327_p0), %s1079_s17, 4096  }
 0x218   : > { %1588 = vsyncadd (!%p1327_p0), %s1079_s17, 4294963200  ;;  %s2661_s24 = sld [smem:[#allocation26_spill]]  ;;  %s2662_s21 = sld [smem:[#allocation22_spill]] }
 0x219   : > { %s2663_s22 = sld [smem:[#allocation23_spill]]  ;;  %s2664_s23 = sld [smem:[#allocation27_spill]] }
 0x21e   : > { %p22_p6 = scmp.ge.s32.totalorder %s2661_s24, 4  }
 0x220   :  { %24 = sbr.rel (!%p22_p6) target bundleno = 16 (0x10), region = 130 }
 0x227   :  { %1084 = vsyncpa [#allocation5], 1 }
 0x228   :  { %1086 = vsyncpa [#allocation5 + $0x1], 1 }
 0x229   :  { %1087 = vsyncpa [#allocation6], 1 }
 0x22a   :  { %1089 = vsyncpa [#allocation6 + $0x1], 1 }
 0x22b   :  { %1090 = vsyncpa [#allocation7], 1 }
 0x22c   :  { %1092 = vsyncpa [#allocation7 + $0x1], 1 }
 0x22d   :  { %1093 = vsyncpa [#allocation10], 1 }
 0x22e   :  { %1094 = vsyncpa [#allocation13], 1 }

</bundles_post_ra>
